<compile_context>
chip_gen: v6e
topology: v6e:2x2x1
jax: 0.10.0
libtpu: 0.0.40
codegen_flags: <defaults>
</compile_context>

<pallas_src>
import math
import functools
import inspect

import jax
import jax.numpy as jnp
from jax.experimental import pallas as pl
from jax.experimental.pallas import tpu as pltpu


def _round_up(x, m):
    return (x + m - 1) // m * m


def _mha_kernel(q_ref, k_ref, v_ref, mask_ref,
                wq_ref, bq_ref, wk_ref, bk_ref, wv_ref, bv_ref,
                wo_ref, bo_ref,
                out_ref,
                kp_ref, vp_ref, x_ref,
                *, n_head, d_k):
    """One (batch, q-tile) per grid step.

    Ref shapes (per block):
      q_ref    : (1, tq, F)   bf16
      k_ref    : (1, T2, F)   bf16
      v_ref    : (1, T2, F)   bf16
      mask_ref : (1, Tm, T2)  int32 (Tm is 1 or tq)
      wq/wk/wv : (F, F)       bf16  (wq pre-scaled by 1/sqrt(d_k))
      bq/bk/bv : (1, F)       f32   (bq pre-scaled by 1/sqrt(d_k))
      wo_ref   : (F, F)       bf16
      bo_ref   : (1, F)       f32
      out_ref  : (1, tq, F)   f32
    VMEM scratch:
      kp_ref, vp_ref : (T2, F) bf16  projected K / V (valid for the batch)
      x_ref          : (tq, F) bf16  concatenated per-head attention outputs
    """
    min_value = jnp.finfo(jnp.float32).min

    # Project K/V once per batch: the q-tile axis is the inner "arbitrary"
    # grid axis, so this runs only on the first q-tile of every batch and the
    # scratch stays valid for all remaining q-tiles of that batch.
    @pl.when(pl.program_id(1) == 0)
    def _():
        kp_ref[...] = (jnp.dot(k_ref[0], wk_ref[...],
                               preferred_element_type=jnp.float32)
                       + bk_ref[...]).astype(jnp.bfloat16)
        vp_ref[...] = (jnp.dot(v_ref[0], wv_ref[...],
                               preferred_element_type=jnp.float32)
                       + bv_ref[...]).astype(jnp.bfloat16)

    # Lane-dense Q projection (1/sqrt(d_k) already folded into wq/bq).
    qp = (jnp.dot(q_ref[0], wq_ref[...], preferred_element_type=jnp.float32)
          + bq_ref[...]).astype(jnp.bfloat16)                       # (tq, F)

    # Mask kept at (Tm, T2); broadcast over the query rows is implicit
    # (sublane broadcast), no materialized (tq, T2) temporaries.
    neg = mask_ref[0] == 0                                          # (Tm, T2)

    # Per-head attention; heads are static lane slices of the full-width
    # projections.  Per-head outputs are written into the (tq, F) slab so the
    # output projection below is a single lane-dense matmul.
    # TODO(synk): for n_head >= 8 use lax.fori_loop to bound live ranges of
    #             the (tq, T2) temporaries.
    for h in range(n_head):
        lo = h * d_k
        qh = qp[:, lo:lo + d_k]                                     # (tq, d_k)
        kh = kp_ref[:, lo:lo + d_k]                                 # (T2, d_k)
        vh = vp_ref[:, lo:lo + d_k]                                 # (T2, d_k)

        # scores = qh @ kh^T without materializing a transpose.
        s = jax.lax.dot_general(qh, kh, (((1,), (1,)), ((), ())),
                                preferred_element_type=jnp.float32)  # (tq, T2)
        s = jnp.where(neg, min_value, s)                            # masked_fill(min)

        m = jnp.max(s, axis=-1, keepdims=True)
        p = jnp.exp(s - m)
        denom = jnp.sum(p, axis=-1, keepdims=True)
        attn = p * pl.reciprocal(denom, approx=True)                # EUP slot
        attn = jnp.where(neg, 0.0, attn)                            # masked_fill(0.0)
        # dropout(p=0.0) -> identity

        x_ref[:, lo:lo + d_k] = jnp.dot(
            attn.astype(jnp.bfloat16), vh,
            preferred_element_type=jnp.float32).astype(jnp.bfloat16)

    # Single lane-dense output projection of the concatenated head outputs.
    out_ref[0] = (jnp.dot(x_ref[...], wo_ref[...],
                          preferred_element_type=jnp.float32)
                  + bo_ref[...]).astype(out_ref.dtype)


def _choose_tq(T1, T2):
    """Query-time tile: big enough to amortize the ~0.35us per-step overhead,
    small enough that the (tq, T2) f32 score temporaries stay inside VMEM."""
    if T1 <= 512:
        return _round_up(max(T1, 1), 8)
    tq = 512
    while tq > 128 and 4 * tq * T2 * 4 > (16 << 20):
        tq //= 2
    return tq


def _supports_single_buffering():
    try:
        return ("pipeline_mode" in inspect.signature(pl.BlockSpec).parameters
                and hasattr(pl, "Buffered"))
    except (TypeError, ValueError):
        return False


def _build_and_call(q_bf, k_bf, v_bf, mask_i,
                    wq, bq, wk, bk, wv, bv, wo, bo,
                    *, n_head, d_k, tq, single_buffer_weights):
    B, T1_pad, F = q_bf.shape
    T2 = k_bf.shape[1]
    Tm = mask_i.shape[1]
    n_q_tiles = T1_pad // tq

    const_kw = {}
    if single_buffer_weights:
        # Weights never change across the grid: single-buffer them and give
        # the reclaimed VMEM to larger q-tiles / activation buffering.
        const_kw["pipeline_mode"] = pl.Buffered(1)

    q_spec = pl.BlockSpec((1, tq, F), lambda b, i: (b, i, 0))
    kv_spec = pl.BlockSpec((1, T2, F), lambda b, i: (b, 0, 0))
    if Tm == 1:
        mask_spec = pl.BlockSpec((1, 1, T2), lambda b, i: (b, 0, 0))
    else:
        mask_spec = pl.BlockSpec((1, tq, T2), lambda b, i: (b, i, 0))
    w_spec = pl.BlockSpec((F, F), lambda b, i: (0, 0), **const_kw)
    bias_spec = pl.BlockSpec((1, F), lambda b, i: (0, 0), **const_kw)
    out_spec = pl.BlockSpec((1, tq, F), lambda b, i: (b, i, 0))

    # VMEM budget from the actual block / scratch sizes (capped at 64 MiB so
    # the same tiling also fits a v7x TensorCore).
    w_bufs = 1 if single_buffer_weights else 2
    mask_rows = 1 if Tm == 1 else tq
    vmem_need = (
        2 * tq * F * 2                              # q blocks (x2 bufs, bf16)
        + 2 * 2 * T2 * F * 2                        # k + v blocks
        + 2 * mask_rows * T2 * 4                    # mask blocks
        + w_bufs * (4 * F * F * 2 + 4 * F * 4)      # weights + biases
        + 2 * tq * F * 4                            # output blocks (f32)
        + 2 * T2 * F * 2 + tq * F * 2               # kp / vp / x scratch
        + 6 * tq * T2 * 4)                          # softmax temporaries
    vmem_limit = int(min(max(int(vmem_need * 1.25), 32 << 20), 64 << 20))

    # Cost estimate for actually-executed work (K/V projected once per batch).
    flops = int(
        2 * B * T1_pad * F * F                      # Q projection
        + 2 * 2 * B * T2 * F * F                    # K, V projections
        + 2 * 2 * B * T1_pad * T2 * F               # scores + attn @ V
        + 2 * B * T1_pad * F * F)                   # output projection
    transcendentals = int(B * n_head * T1_pad * T2)
    bytes_accessed = int(
        B * T1_pad * F * 2 + 2 * B * T2 * F * 2     # q, k, v (bf16)
        + B * T1_pad * F * 4                        # output (f32)
        + B * Tm * T2 * 4                           # mask
        + 4 * F * F * 2 + 4 * F * 4)                # weights + biases

    kernel = functools.partial(_mha_kernel, n_head=n_head, d_k=d_k)

    return pl.pallas_call(
        kernel,
        out_shape=jax.ShapeDtypeStruct((B, T1_pad, F), jnp.float32),
        grid_spec=pltpu.PrefetchScalarGridSpec(
            num_scalar_prefetch=0,
            grid=(B, n_q_tiles),
            in_specs=[
                q_spec, kv_spec, kv_spec, mask_spec,
                w_spec, bias_spec, w_spec, bias_spec, w_spec, bias_spec,
                w_spec, bias_spec,
            ],
            out_specs=out_spec,
            scratch_shapes=[
                pltpu.VMEM((T2, F), jnp.bfloat16),   # projected K (per batch)
                pltpu.VMEM((T2, F), jnp.bfloat16),   # projected V (per batch)
                pltpu.VMEM((tq, F), jnp.bfloat16),   # concatenated head outs
            ],
        ),
        compiler_params=pltpu.CompilerParams(
            # q-tile axis must be sequential ("arbitrary") so the per-batch
            # projected K/V scratch computed at program_id(1)==0 is reused;
            # batch stays "parallel" for megacore / v7x's two TensorCores.
            dimension_semantics=("parallel", "arbitrary"),
            vmem_limit_bytes=vmem_limit),
        cost_estimate=pl.CostEstimate(
            flops=flops, transcendentals=transcendentals,
            bytes_accessed=bytes_accessed),
    )(q_bf, k_bf, v_bf, mask_i, wq, bq, wk, bk, wv, bv, wo, bo)


def multi_headed_attention(query, key, value, mask, params, *, n_head, tq=None):
    """Pallas-backed forward pass of espnet MultiHeadedAttention.

    query: (B, T1, F), key/value: (B, T2, F), mask: (B, 1, T2) or (B, T1, T2)
    (int or bool), or None. params holds wq,bq,wk,bk,wv,bv,wo,bo with weights
    already transposed to (in_features, out_features). Returns (B, T1, F) f32.
    """
    B, T1, F = query.shape
    T2 = key.shape[1]
    d_k = F // n_head
    assert n_head * d_k == F

    if mask is None:
        mask = jnp.ones((B, 1, T2), jnp.int32)
    mask = mask.astype(jnp.int32)
    Tm = mask.shape[1]
    assert Tm in (1, T1), "mask must be (B, 1, T2) or (B, T1, T2)"

    if tq is None:
        tq = _choose_tq(T1, T2)
    tq = max(8, _round_up(min(tq, _round_up(T1, 8)), 8))

    # Pad T1 up to a multiple of tq (keeps steady-state tile size and pipeline
    # depth instead of collapsing to a single giant block); slice back after.
    T1_pad = _round_up(T1, tq)
    if T1_pad != T1:
        query = jnp.pad(query, ((0, 0), (0, T1_pad - T1), (0, 0)))
        if Tm != 1:
            mask = jnp.pad(mask, ((0, 0), (0, T1_pad - T1), (0, 0)))

    # bf16 activations / weights on the MXU; biases and accumulation stay f32.
    q_bf = query.astype(jnp.bfloat16)
    k_bf = key.astype(jnp.bfloat16)
    v_bf = value.astype(jnp.bfloat16)

    # Fold 1/sqrt(d_k) into the Q projection (linear => equivalent scaling).
    scale = 1.0 / math.sqrt(d_k)
    wq = (params["wq"] * scale).astype(jnp.bfloat16)
    bq = (params["bq"] * scale).reshape(1, F).astype(jnp.float32)
    wk = params["wk"].astype(jnp.bfloat16)
    bk = params["bk"].reshape(1, F).astype(jnp.float32)
    wv = params["wv"].astype(jnp.bfloat16)
    bv = params["bv"].reshape(1, F).astype(jnp.float32)
    wo = params["wo"].astype(jnp.bfloat16)
    bo = params["bo"].reshape(1, F).astype(jnp.float32)

    call = functools.partial(
        _build_and_call, q_bf, k_bf, v_bf, mask,
        wq, bq, wk, bk, wv, bv, wo, bo,
        n_head=n_head, d_k=d_k, tq=tq)

    if _supports_single_buffering():
        try:
            out = call(single_buffer_weights=True)
        except Exception:   # older Pallas / unsupported Buffered(1): fall back
            out = call(single_buffer_weights=False)
    else:
        out = call(single_buffer_weights=False)

    return out[:, :T1, :]


def reference_mha(query, key, value, mask, params, *, n_head):
    """Pure-JAX f32 reference mirroring the PyTorch forward exactly."""
    B, T1, F = query.shape
    T2 = key.shape[1]
    d_k = F // n_head

    def lin(x, w, b):
        return x @ w + b

    q = lin(query, params["wq"], params["bq"]).reshape(B, T1, n_head, d_k).transpose(0, 2, 1, 3)
    k = lin(key, params["wk"], params["bk"]).reshape(B, T2, n_head, d_k).transpose(0, 2, 1, 3)
    v = lin(value, params["wv"], params["bv"]).reshape(B, T2, n_head, d_k).transpose(0, 2, 1, 3)

    scores = jnp.einsum("bhtd,bhsd->bhts", q, k) / math.sqrt(d_k)
    m = (mask[:, None, :, :] == 0)                       # (B, 1, Tm, T2)
    min_value = jnp.finfo(scores.dtype).min
    scores = jnp.where(m, min_value, scores)
    attn = jax.nn.softmax(scores, axis=-1)
    attn = jnp.where(m, 0.0, attn)
    x = jnp.einsum("bhts,bhsd->bhtd", attn, v)
    x = x.transpose(0, 2, 1, 3).reshape(B, T1, F)
    return lin(x, params["wo"], params["bo"])


if __name__ == "__main__":
    n_head = 4
    n_feat = 32

    key0 = jax.random.PRNGKey(0)
    keys = jax.random.split(key0, 16)

    # Parameters (torch Linear is (out, in); we store transposed (in, out)).
    scale = 0.1
    params = {
        "wq": scale * jax.random.normal(keys[0], (n_feat, n_feat), jnp.float32),
        "bq": scale * jax.random.normal(keys[1], (n_feat,), jnp.float32),
        "wk": scale * jax.random.normal(keys[2], (n_feat, n_feat), jnp.float32),
        "bk": scale * jax.random.normal(keys[3], (n_feat,), jnp.float32),
        "wv": scale * jax.random.normal(keys[4], (n_feat, n_feat), jnp.float32),
        "bv": scale * jax.random.normal(keys[5], (n_feat,), jnp.float32),
        "wo": scale * jax.random.normal(keys[6], (n_feat, n_feat), jnp.float32),
        "bo": scale * jax.random.normal(keys[7], (n_feat,), jnp.float32),
    }

    # --- Case 1: (B, 1, T2) mask, single q tile ---------------------------
    B, T1, T2 = 2, 8, 8
    query = jax.random.normal(keys[8], (B, T1, n_feat), jnp.float32)
    key_in = jax.random.normal(keys[9], (B, T2, n_feat), jnp.float32)
    value = jax.random.normal(keys[10], (B, T2, n_feat), jnp.float32)
    mask = jnp.ones((B, 1, T2), jnp.int32).at[0, 0, T2 - 2:].set(0)

    out = jax.block_until_ready(
        multi_headed_attention(query, key_in, value, mask, params, n_head=n_head))
    ref = reference_mha(query, key_in, value, mask, params, n_head=n_head)
    assert out.shape == (B, T1, n_feat)
    assert jnp.allclose(out, ref, atol=5e-2, rtol=5e-2), (
        f"case1 max abs diff {jnp.max(jnp.abs(out - ref))}")

    # --- Case 2: (B, T1, T2) mask, multiple q tiles + T1 padding ----------
    B, T1, T2 = 2, 20, 24
    query = jax.random.normal(keys[11], (B, T1, n_feat), jnp.float32)
    key_in = jax.random.normal(keys[12], (B, T2, n_feat), jnp.float32)
    value = jax.random.normal(keys[13], (B, T2, n_feat), jnp.float32)
    mask = jnp.broadcast_to(
        (jnp.arange(T2)[None, :] <= (jnp.arange(T1)[:, None] + 4)),
        (B, T1, T2)).astype(jnp.int32)

    out = jax.block_until_ready(
        multi_headed_attention(query, key_in, value, mask, params,
                               n_head=n_head, tq=8))
    ref = reference_mha(query, key_in, value, mask, params, n_head=n_head)
    assert out.shape == (B, T1, n_feat)
    assert jnp.allclose(out, ref, atol=5e-2, rtol=5e-2), (
        f"case2 max abs diff {jnp.max(jnp.abs(out - ref))}")

    print("KERNEL_OK")
</pallas_src>

<mosaic_0001>
module attributes {stable_mosaic.version = 11 : i64} {
  func.func @_mha_kernel(%arg0: i32, %arg1: i32, %arg2: memref<1x8x32xbf16, #tpu.memory_space<vmem>>, %arg3: memref<1x8x32xbf16, #tpu.memory_space<vmem>>, %arg4: memref<1x8x32xbf16, #tpu.memory_space<vmem>>, %arg5: memref<1x1x8xi32, #tpu.memory_space<vmem>>, %arg6: memref<32x32xbf16, #tpu.memory_space<vmem>>, %arg7: memref<1x32xf32, #tpu.memory_space<vmem>>, %arg8: memref<32x32xbf16, #tpu.memory_space<vmem>>, %arg9: memref<1x32xf32, #tpu.memory_space<vmem>>, %arg10: memref<32x32xbf16, #tpu.memory_space<vmem>>, %arg11: memref<1x32xf32, #tpu.memory_space<vmem>>, %arg12: memref<32x32xbf16, #tpu.memory_space<vmem>>, %arg13: memref<1x32xf32, #tpu.memory_space<vmem>>, %arg14: memref<1x8x32xf32, #tpu.memory_space<vmem>>, %arg15: memref<8x32xbf16, #tpu.memory_space<vmem>>, %arg16: memref<8x32xbf16, #tpu.memory_space<vmem>>, %arg17: memref<8x32xbf16, #tpu.memory_space<vmem>>) attributes {dimension_semantics = [#tpu.dimension_semantics<parallel>, #tpu.dimension_semantics<arbitrary>], iteration_bounds = array<i64: 2, 1>, scalar_prefetch = 0 : i64, scratch_operands = 3 : i64, tpu.core_type = #tpu.core_type<tc>, window_params = [{transform_indices = @transform_0, window_bounds = array<i64: 1, 8, 32>}, {transform_indices = @transform_1, window_bounds = array<i64: 1, 8, 32>}, {transform_indices = @transform_2, window_bounds = array<i64: 1, 8, 32>}, {transform_indices = @transform_3, window_bounds = array<i64: 1, 1, 8>}, {pipeline_mode = #tpu.pipeline_mode<synchronous>, transform_indices = @transform_4, window_bounds = array<i64: 32, 32>}, {pipeline_mode = #tpu.pipeline_mode<synchronous>, transform_indices = @transform_5, window_bounds = array<i64: 1, 32>}, {pipeline_mode = #tpu.pipeline_mode<synchronous>, transform_indices = @transform_6, window_bounds = array<i64: 32, 32>}, {pipeline_mode = #tpu.pipeline_mode<synchronous>, transform_indices = @transform_7, window_bounds = array<i64: 1, 32>}, {pipeline_mode = #tpu.pipeline_mode<synchronous>, transform_indices = @transform_8, window_bounds = array<i64: 32, 32>}, {pipeline_mode = #tpu.pipeline_mode<synchronous>, transform_indices = @transform_9, window_bounds = array<i64: 1, 32>}, {pipeline_mode = #tpu.pipeline_mode<synchronous>, transform_indices = @transform_10, window_bounds = array<i64: 32, 32>}, {pipeline_mode = #tpu.pipeline_mode<synchronous>, transform_indices = @transform_11, window_bounds = array<i64: 1, 32>}, {transform_indices = @transform_12, window_bounds = array<i64: 1, 8, 32>}]} {
    %c0_i32 = arith.constant 0 : i32
    %0 = arith.cmpi eq, %arg1, %c0_i32 : i32
    %1 = arith.extui %0 : i1 to i32
    %c0_i32_0 = arith.constant 0 : i32
    %2 = arith.cmpi ne, %1, %c0_i32_0 : i32
    scf.if %2 {
      %c0_66 = arith.constant 0 : index
      %c0_67 = arith.constant 0 : index
      %c0_68 = arith.constant 0 : index
      %128 = vector.load %arg3[%c0_66, %c0_67, %c0_68] : memref<1x8x32xbf16, #tpu.memory_space<vmem>>, vector<1x8x32xbf16>
      %129 = vector.shape_cast %128 : vector<1x8x32xbf16> to vector<8x32xbf16>
      %c0_69 = arith.constant 0 : index
      %c0_70 = arith.constant 0 : index
      %130 = vector.load %arg8[%c0_69, %c0_70] : memref<32x32xbf16, #tpu.memory_space<vmem>>, vector<32x32xbf16>
      %cst_71 = arith.constant dense<0.000000e+00> : vector<8x32xf32>
      %131 = tpu.matmul %129, %130, %cst_71 {dimension_numbers = #tpu.dot_dimension_numbers<[1], [0], [0], [1], [0, 0, 1, 1], [], []>} : vector<8x32xbf16>, vector<32x32xbf16>, vector<8x32xf32> -> vector<8x32xf32>
      %c0_72 = arith.constant 0 : index
      %c0_73 = arith.constant 0 : index
      %132 = vector.load %arg9[%c0_72, %c0_73] : memref<1x32xf32, #tpu.memory_space<vmem>>, vector<1x32xf32>
      %133 = vector.broadcast %132 : vector<1x32xf32> to vector<8x32xf32>
      %134 = arith.addf %131, %133 : vector<8x32xf32>
      %135 = arith.truncf %134 : vector<8x32xf32> to vector<8x32xbf16>
      %c0_74 = arith.constant 0 : index
      %c0_75 = arith.constant 0 : index
      %136 = vector.load %arg15[%c0_74, %c0_75] : memref<8x32xbf16, #tpu.memory_space<vmem>>, vector<8x32xbf16>
      tpu.vector_store %arg15[%c0_74, %c0_75], %135 {strides = array<i32>} : memref<8x32xbf16, #tpu.memory_space<vmem>>, vector<8x32xbf16>,
      %c0_76 = arith.constant 0 : index
      %c0_77 = arith.constant 0 : index
      %c0_78 = arith.constant 0 : index
      %137 = vector.load %arg4[%c0_76, %c0_77, %c0_78] : memref<1x8x32xbf16, #tpu.memory_space<vmem>>, vector<1x8x32xbf16>
      %138 = vector.shape_cast %137 : vector<1x8x32xbf16> to vector<8x32xbf16>
      %c0_79 = arith.constant 0 : index
      %c0_80 = arith.constant 0 : index
      %139 = vector.load %arg10[%c0_79, %c0_80] : memref<32x32xbf16, #tpu.memory_space<vmem>>, vector<32x32xbf16>
      %cst_81 = arith.constant dense<0.000000e+00> : vector<8x32xf32>
      %140 = tpu.matmul %138, %139, %cst_81 {dimension_numbers = #tpu.dot_dimension_numbers<[1], [0], [0], [1], [0, 0, 1, 1], [], []>} : vector<8x32xbf16>, vector<32x32xbf16>, vector<8x32xf32> -> vector<8x32xf32>
      %c0_82 = arith.constant 0 : index
      %c0_83 = arith.constant 0 : index
      %141 = vector.load %arg11[%c0_82, %c0_83] : memref<1x32xf32, #tpu.memory_space<vmem>>, vector<1x32xf32>
      %142 = vector.broadcast %141 : vector<1x32xf32> to vector<8x32xf32>
      %143 = arith.addf %140, %142 : vector<8x32xf32>
      %144 = arith.truncf %143 : vector<8x32xf32> to vector<8x32xbf16>
      %c0_84 = arith.constant 0 : index
      %c0_85 = arith.constant 0 : index
      %145 = vector.load %arg16[%c0_84, %c0_85] : memref<8x32xbf16, #tpu.memory_space<vmem>>, vector<8x32xbf16>
      tpu.vector_store %arg16[%c0_84, %c0_85], %144 {strides = array<i32>} : memref<8x32xbf16, #tpu.memory_space<vmem>>, vector<8x32xbf16>,
    } else {
    }
    %c0 = arith.constant 0 : index
    %c0_1 = arith.constant 0 : index
    %c0_2 = arith.constant 0 : index
    %3 = vector.load %arg2[%c0, %c0_1, %c0_2] : memref<1x8x32xbf16, #tpu.memory_space<vmem>>, vector<1x8x32xbf16>
    %4 = vector.shape_cast %3 : vector<1x8x32xbf16> to vector<8x32xbf16>
    %c0_3 = arith.constant 0 : index
    %c0_4 = arith.constant 0 : index
    %5 = vector.load %arg6[%c0_3, %c0_4] : memref<32x32xbf16, #tpu.memory_space<vmem>>, vector<32x32xbf16>
    %cst = arith.constant dense<0.000000e+00> : vector<8x32xf32>
    %6 = tpu.matmul %4, %5, %cst {dimension_numbers = #tpu.dot_dimension_numbers<[1], [0], [0], [1], [0, 0, 1, 1], [], []>} : vector<8x32xbf16>, vector<32x32xbf16>, vector<8x32xf32> -> vector<8x32xf32>
    %c0_5 = arith.constant 0 : index
    %c0_6 = arith.constant 0 : index
    %7 = vector.load %arg7[%c0_5, %c0_6] : memref<1x32xf32, #tpu.memory_space<vmem>>, vector<1x32xf32>
    %8 = vector.broadcast %7 : vector<1x32xf32> to vector<8x32xf32>
    %9 = arith.addf %6, %8 : vector<8x32xf32>
    %10 = arith.truncf %9 : vector<8x32xf32> to vector<8x32xbf16>
    %c0_7 = arith.constant 0 : index
    %c0_8 = arith.constant 0 : index
    %c0_9 = arith.constant 0 : index
    %11 = vector.load %arg5[%c0_7, %c0_8, %c0_9] : memref<1x1x8xi32, #tpu.memory_space<vmem>>, vector<1x1x8xi32>
    %12 = vector.shape_cast %11 : vector<1x1x8xi32> to vector<1x8xi32>
    %c0_i32_10 = arith.constant 0 : i32
    %13 = vector.broadcast %c0_i32_10 : i32 to vector<1x8xi32>
    %14 = arith.cmpi eq, %12, %13 : vector<1x8xi32>
    %15 = vector.extract_strided_slice %10 {offsets = [0, 0], sizes = [8, 8], strides = [1, 1]} : vector<8x32xbf16> to vector<8x8xbf16>
    %c0_11 = arith.constant 0 : index
    %c0_12 = arith.constant 0 : index
    %16 = vector.load %arg15[%c0_11, %c0_12] : memref<8x32xbf16, #tpu.memory_space<vmem>>, vector<8x8xbf16>
    %c0_13 = arith.constant 0 : index
    %c0_14 = arith.constant 0 : index
    %17 = vector.load %arg16[%c0_13, %c0_14] : memref<8x32xbf16, #tpu.memory_space<vmem>>, vector<8x8xbf16>
    %cst_15 = arith.constant dense<0.000000e+00> : vector<8x8xf32>
    %18 = tpu.matmul %15, %16, %cst_15 {dimension_numbers = #tpu.dot_dimension_numbers<[1], [1], [0], [0], [0, 0, 1, 0], [], []>} : vector<8x8xbf16>, vector<8x8xbf16>, vector<8x8xf32> -> vector<8x8xf32>
    %cst_16 = arith.constant -3.40282347E+38 : f32
    %19 = vector.shape_cast %14 : vector<1x8xi1> to vector<1x8xi1>
    %20 = vector.broadcast %19 : vector<1x8xi1> to vector<8x8xi1>
    %21 = vector.broadcast %cst_16 : f32 to vector<8x8xf32>
    %22 = arith.select %20, %21, %18 : vector<8x8xi1>, vector<8x8xf32>
    %cst_17 = arith.constant dense<0xFF800000> : vector<8xf32>
    %23 = vector.multi_reduction <maximumf>, %22, %cst_17 [1] : vector<8x8xf32> to vector<8xf32>
    %24 = vector.shape_cast %23 : vector<8xf32> to vector<8x1xf32>
    %25 = vector.broadcast %24 : vector<8x1xf32> to vector<8x8xf32>
    %26 = arith.subf %22, %25 : vector<8x8xf32>
    %27 = math.exp %26 : vector<8x8xf32>
    %cst_18 = arith.constant dense<0.000000e+00> : vector<8xf32>
    %28 = vector.multi_reduction <add>, %27, %cst_18 [1] : vector<8x8xf32> to vector<8xf32>
    %29 = vector.shape_cast %28 : vector<8xf32> to vector<8x1xf32>
    %30 = tpu.reciprocal %29 {approx = true} : vector<8x1xf32> -> vector<8x1xf32>
    %31 = vector.broadcast %30 : vector<8x1xf32> to vector<8x8xf32>
    %32 = arith.mulf %27, %31 : vector<8x8xf32>
    %cst_19 = arith.constant 0.000000e+00 : f32
    %33 = vector.shape_cast %14 : vector<1x8xi1> to vector<1x8xi1>
    %34 = vector.broadcast %33 : vector<1x8xi1> to vector<8x8xi1>
    %35 = vector.broadcast %cst_19 : f32 to vector<8x8xf32>
    %36 = arith.select %34, %35, %32 : vector<8x8xi1>, vector<8x8xf32>
    %37 = arith.truncf %36 : vector<8x8xf32> to vector<8x8xbf16>
    %cst_20 = arith.constant dense<0.000000e+00> : vector<8x8xf32>
    %38 = tpu.matmul %37, %17, %cst_20 {dimension_numbers = #tpu.dot_dimension_numbers<[1], [0], [0], [1], [0, 0, 1, 1], [], []>} : vector<8x8xbf16>, vector<8x8xbf16>, vector<8x8xf32> -> vector<8x8xf32>
    %39 = arith.truncf %38 : vector<8x8xf32> to vector<8x8xbf16>
    %c0_21 = arith.constant 0 : index
    %c0_22 = arith.constant 0 : index
    %40 = vector.load %arg17[%c0_21, %c0_22] : memref<8x32xbf16, #tpu.memory_space<vmem>>, vector<8x8xbf16>
    tpu.vector_store %arg17[%c0_21, %c0_22], %39 {strides = array<i32>} : memref<8x32xbf16, #tpu.memory_space<vmem>>, vector<8x8xbf16>,
    %41 = vector.extract_strided_slice %10 {offsets = [0, 8], sizes = [8, 8], strides = [1, 1]} : vector<8x32xbf16> to vector<8x8xbf16>
    %c0_23 = arith.constant 0 : index
    %c8 = arith.constant 8 : index
    %42 = vector.load %arg15[%c0_23, %c8] : memref<8x32xbf16, #tpu.memory_space<vmem>>, vector<8x8xbf16>
    %c0_24 = arith.constant 0 : index
    %c8_25 = arith.constant 8 : index
    %43 = vector.load %arg16[%c0_24, %c8_25] : memref<8x32xbf16, #tpu.memory_space<vmem>>, vector<8x8xbf16>
    %cst_26 = arith.constant dense<0.000000e+00> : vector<8x8xf32>
    %44 = tpu.matmul %41, %42, %cst_26 {dimension_numbers = #tpu.dot_dimension_numbers<[1], [1], [0], [0], [0, 0, 1, 0], [], []>} : vector<8x8xbf16>, vector<8x8xbf16>, vector<8x8xf32> -> vector<8x8xf32>
    %cst_27 = arith.constant -3.40282347E+38 : f32
    %45 = vector.shape_cast %14 : vector<1x8xi1> to vector<1x8xi1>
    %46 = vector.broadcast %45 : vector<1x8xi1> to vector<8x8xi1>
    %47 = vector.broadcast %cst_27 : f32 to vector<8x8xf32>
    %48 = arith.select %46, %47, %44 : vector<8x8xi1>, vector<8x8xf32>
    %cst_28 = arith.constant dense<0xFF800000> : vector<8xf32>
    %49 = vector.multi_reduction <maximumf>, %48, %cst_28 [1] : vector<8x8xf32> to vector<8xf32>
    %50 = vector.shape_cast %49 : vector<8xf32> to vector<8x1xf32>
    %51 = vector.broadcast %50 : vector<8x1xf32> to vector<8x8xf32>
    %52 = arith.subf %48, %51 : vector<8x8xf32>
    %53 = math.exp %52 : vector<8x8xf32>
    %cst_29 = arith.constant dense<0.000000e+00> : vector<8xf32>
    %54 = vector.multi_reduction <add>, %53, %cst_29 [1] : vector<8x8xf32> to vector<8xf32>
    %55 = vector.shape_cast %54 : vector<8xf32> to vector<8x1xf32>
    %56 = tpu.reciprocal %55 {approx = true} : vector<8x1xf32> -> vector<8x1xf32>
    %57 = vector.broadcast %56 : vector<8x1xf32> to vector<8x8xf32>
    %58 = arith.mulf %53, %57 : vector<8x8xf32>
    %cst_30 = arith.constant 0.000000e+00 : f32
    %59 = vector.shape_cast %14 : vector<1x8xi1> to vector<1x8xi1>
    %60 = vector.broadcast %59 : vector<1x8xi1> to vector<8x8xi1>
    %61 = vector.broadcast %cst_30 : f32 to vector<8x8xf32>
    %62 = arith.select %60, %61, %58 : vector<8x8xi1>, vector<8x8xf32>
    %63 = arith.truncf %62 : vector<8x8xf32> to vector<8x8xbf16>
    %cst_31 = arith.constant dense<0.000000e+00> : vector<8x8xf32>
    %64 = tpu.matmul %63, %43, %cst_31 {dimension_numbers = #tpu.dot_dimension_numbers<[1], [0], [0], [1], [0, 0, 1, 1], [], []>} : vector<8x8xbf16>, vector<8x8xbf16>, vector<8x8xf32> -> vector<8x8xf32>
    %65 = arith.truncf %64 : vector<8x8xf32> to vector<8x8xbf16>
    %c0_32 = arith.constant 0 : index
    %c8_33 = arith.constant 8 : index
    %66 = vector.load %arg17[%c0_32, %c8_33] : memref<8x32xbf16, #tpu.memory_space<vmem>>, vector<8x8xbf16>
    tpu.vector_store %arg17[%c0_32, %c8_33], %65 {strides = array<i32>} : memref<8x32xbf16, #tpu.memory_space<vmem>>, vector<8x8xbf16>,
    %67 = vector.extract_strided_slice %10 {offsets = [0, 16], sizes = [8, 8], strides = [1, 1]} : vector<8x32xbf16> to vector<8x8xbf16>
    %c0_34 = arith.constant 0 : index
    %c16 = arith.constant 16 : index
    %68 = vector.load %arg15[%c0_34, %c16] : memref<8x32xbf16, #tpu.memory_space<vmem>>, vector<8x8xbf16>
    %c0_35 = arith.constant 0 : index
    %c16_36 = arith.constant 16 : index
    %69 = vector.load %arg16[%c0_35, %c16_36] : memref<8x32xbf16, #tpu.memory_space<vmem>>, vector<8x8xbf16>
    %cst_37 = arith.constant dense<0.000000e+00> : vector<8x8xf32>
    %70 = tpu.matmul %67, %68, %cst_37 {dimension_numbers = #tpu.dot_dimension_numbers<[1], [1], [0], [0], [0, 0, 1, 0], [], []>} : vector<8x8xbf16>, vector<8x8xbf16>, vector<8x8xf32> -> vector<8x8xf32>
    %cst_38 = arith.constant -3.40282347E+38 : f32
    %71 = vector.shape_cast %14 : vector<1x8xi1> to vector<1x8xi1>
    %72 = vector.broadcast %71 : vector<1x8xi1> to vector<8x8xi1>
    %73 = vector.broadcast %cst_38 : f32 to vector<8x8xf32>
    %74 = arith.select %72, %73, %70 : vector<8x8xi1>, vector<8x8xf32>
    %cst_39 = arith.constant dense<0xFF800000> : vector<8xf32>
    %75 = vector.multi_reduction <maximumf>, %74, %cst_39 [1] : vector<8x8xf32> to vector<8xf32>
    %76 = vector.shape_cast %75 : vector<8xf32> to vector<8x1xf32>
    %77 = vector.broadcast %76 : vector<8x1xf32> to vector<8x8xf32>
    %78 = arith.subf %74, %77 : vector<8x8xf32>
    %79 = math.exp %78 : vector<8x8xf32>
    %cst_40 = arith.constant dense<0.000000e+00> : vector<8xf32>
    %80 = vector.multi_reduction <add>, %79, %cst_40 [1] : vector<8x8xf32> to vector<8xf32>
    %81 = vector.shape_cast %80 : vector<8xf32> to vector<8x1xf32>
    %82 = tpu.reciprocal %81 {approx = true} : vector<8x1xf32> -> vector<8x1xf32>
    %83 = vector.broadcast %82 : vector<8x1xf32> to vector<8x8xf32>
    %84 = arith.mulf %79, %83 : vector<8x8xf32>
    %cst_41 = arith.constant 0.000000e+00 : f32
    %85 = vector.shape_cast %14 : vector<1x8xi1> to vector<1x8xi1>
    %86 = vector.broadcast %85 : vector<1x8xi1> to vector<8x8xi1>
    %87 = vector.broadcast %cst_41 : f32 to vector<8x8xf32>
    %88 = arith.select %86, %87, %84 : vector<8x8xi1>, vector<8x8xf32>
    %89 = arith.truncf %88 : vector<8x8xf32> to vector<8x8xbf16>
    %cst_42 = arith.constant dense<0.000000e+00> : vector<8x8xf32>
    %90 = tpu.matmul %89, %69, %cst_42 {dimension_numbers = #tpu.dot_dimension_numbers<[1], [0], [0], [1], [0, 0, 1, 1], [], []>} : vector<8x8xbf16>, vector<8x8xbf16>, vector<8x8xf32> -> vector<8x8xf32>
    %91 = arith.truncf %90 : vector<8x8xf32> to vector<8x8xbf16>
    %c0_43 = arith.constant 0 : index
    %c16_44 = arith.constant 16 : index
    %92 = vector.load %arg17[%c0_43, %c16_44] : memref<8x32xbf16, #tpu.memory_space<vmem>>, vector<8x8xbf16>
    tpu.vector_store %arg17[%c0_43, %c16_44], %91 {strides = array<i32>} : memref<8x32xbf16, #tpu.memory_space<vmem>>, vector<8x8xbf16>,
    %93 = vector.extract_strided_slice %10 {offsets = [0, 24], sizes = [8, 8], strides = [1, 1]} : vector<8x32xbf16> to vector<8x8xbf16>
    %c0_45 = arith.constant 0 : index
    %c24 = arith.constant 24 : index
    %94 = vector.load %arg15[%c0_45, %c24] : memref<8x32xbf16, #tpu.memory_space<vmem>>, vector<8x8xbf16>
    %c0_46 = arith.constant 0 : index
    %c24_47 = arith.constant 24 : index
    %95 = vector.load %arg16[%c0_46, %c24_47] : memref<8x32xbf16, #tpu.memory_space<vmem>>, vector<8x8xbf16>
    %cst_48 = arith.constant dense<0.000000e+00> : vector<8x8xf32>
    %96 = tpu.matmul %93, %94, %cst_48 {dimension_numbers = #tpu.dot_dimension_numbers<[1], [1], [0], [0], [0, 0, 1, 0], [], []>} : vector<8x8xbf16>, vector<8x8xbf16>, vector<8x8xf32> -> vector<8x8xf32>
    %cst_49 = arith.constant -3.40282347E+38 : f32
    %97 = vector.shape_cast %14 : vector<1x8xi1> to vector<1x8xi1>
    %98 = vector.broadcast %97 : vector<1x8xi1> to vector<8x8xi1>
    %99 = vector.broadcast %cst_49 : f32 to vector<8x8xf32>
    %100 = arith.select %98, %99, %96 : vector<8x8xi1>, vector<8x8xf32>
    %cst_50 = arith.constant dense<0xFF800000> : vector<8xf32>
    %101 = vector.multi_reduction <maximumf>, %100, %cst_50 [1] : vector<8x8xf32> to vector<8xf32>
    %102 = vector.shape_cast %101 : vector<8xf32> to vector<8x1xf32>
    %103 = vector.broadcast %102 : vector<8x1xf32> to vector<8x8xf32>
    %104 = arith.subf %100, %103 : vector<8x8xf32>
    %105 = math.exp %104 : vector<8x8xf32>
    %cst_51 = arith.constant dense<0.000000e+00> : vector<8xf32>
    %106 = vector.multi_reduction <add>, %105, %cst_51 [1] : vector<8x8xf32> to vector<8xf32>
    %107 = vector.shape_cast %106 : vector<8xf32> to vector<8x1xf32>
    %108 = tpu.reciprocal %107 {approx = true} : vector<8x1xf32> -> vector<8x1xf32>
    %109 = vector.broadcast %108 : vector<8x1xf32> to vector<8x8xf32>
    %110 = arith.mulf %105, %109 : vector<8x8xf32>
    %cst_52 = arith.constant 0.000000e+00 : f32
    %111 = vector.shape_cast %14 : vector<1x8xi1> to vector<1x8xi1>
    %112 = vector.broadcast %111 : vector<1x8xi1> to vector<8x8xi1>
    %113 = vector.broadcast %cst_52 : f32 to vector<8x8xf32>
    %114 = arith.select %112, %113, %110 : vector<8x8xi1>, vector<8x8xf32>
    %115 = arith.truncf %114 : vector<8x8xf32> to vector<8x8xbf16>
    %cst_53 = arith.constant dense<0.000000e+00> : vector<8x8xf32>
    %116 = tpu.matmul %115, %95, %cst_53 {dimension_numbers = #tpu.dot_dimension_numbers<[1], [0], [0], [1], [0, 0, 1, 1], [], []>} : vector<8x8xbf16>, vector<8x8xbf16>, vector<8x8xf32> -> vector<8x8xf32>
    %117 = arith.truncf %116 : vector<8x8xf32> to vector<8x8xbf16>
    %c0_54 = arith.constant 0 : index
    %c24_55 = arith.constant 24 : index
    %118 = vector.load %arg17[%c0_54, %c24_55] : memref<8x32xbf16, #tpu.memory_space<vmem>>, vector<8x8xbf16>
    tpu.vector_store %arg17[%c0_54, %c24_55], %117 {strides = array<i32>} : memref<8x32xbf16, #tpu.memory_space<vmem>>, vector<8x8xbf16>,
    %c0_56 = arith.constant 0 : index
    %c0_57 = arith.constant 0 : index
    %119 = vector.load %arg17[%c0_56, %c0_57] : memref<8x32xbf16, #tpu.memory_space<vmem>>, vector<8x32xbf16>
    %c0_58 = arith.constant 0 : index
    %c0_59 = arith.constant 0 : index
    %120 = vector.load %arg12[%c0_58, %c0_59] : memref<32x32xbf16, #tpu.memory_space<vmem>>, vector<32x32xbf16>
    %cst_60 = arith.constant dense<0.000000e+00> : vector<8x32xf32>
    %121 = tpu.matmul %119, %120, %cst_60 {dimension_numbers = #tpu.dot_dimension_numbers<[1], [0], [0], [1], [0, 0, 1, 1], [], []>} : vector<8x32xbf16>, vector<32x32xbf16>, vector<8x32xf32> -> vector<8x32xf32>
    %c0_61 = arith.constant 0 : index
    %c0_62 = arith.constant 0 : index
    %122 = vector.load %arg13[%c0_61, %c0_62] : memref<1x32xf32, #tpu.memory_space<vmem>>, vector<1x32xf32>
    %123 = vector.broadcast %122 : vector<1x32xf32> to vector<8x32xf32>
    %124 = arith.addf %121, %123 : vector<8x32xf32>
    %c0_63 = arith.constant 0 : index
    %c0_64 = arith.constant 0 : index
    %c0_65 = arith.constant 0 : index
    %125 = vector.load %arg14[%c0_63, %c0_64, %c0_65] : memref<1x8x32xf32, #tpu.memory_space<vmem>>, vector<1x8x32xf32>
    %126 = vector.shape_cast %125 : vector<1x8x32xf32> to vector<8x32xf32>
    %127 = vector.shape_cast %124 : vector<8x32xf32> to vector<1x8x32xf32>
    tpu.vector_store %arg14[%c0_63, %c0_64, %c0_65], %127 {strides = array<i32>} : memref<1x8x32xf32, #tpu.memory_space<vmem>>, vector<1x8x32xf32>,
    return
  }
  func.func @transform_0(%arg0: i32, %arg1: i32) -> (i32, i32, i32) {
    %c0_i32 = arith.constant 0 : i32
    %c0_i32_0 = arith.constant 0 : i32
    return %arg0, %arg1, %c0_i32 : i32, i32, i32
  }
  func.func @transform_1(%arg0: i32, %arg1: i32) -> (i32, i32, i32) {
    %c0_i32 = arith.constant 0 : i32
    %c0_i32_0 = arith.constant 0 : i32
    %c0_i32_1 = arith.constant 0 : i32
    return %arg0, %c0_i32, %c0_i32_0 : i32, i32, i32
  }
  func.func @transform_2(%arg0: i32, %arg1: i32) -> (i32, i32, i32) {
    %c0_i32 = arith.constant 0 : i32
    %c0_i32_0 = arith.constant 0 : i32
    %c0_i32_1 = arith.constant 0 : i32
    return %arg0, %c0_i32, %c0_i32_0 : i32, i32, i32
  }
  func.func @transform_3(%arg0: i32, %arg1: i32) -> (i32, i32, i32) {
    %c0_i32 = arith.constant 0 : i32
    %c0_i32_0 = arith.constant 0 : i32
    %c0_i32_1 = arith.constant 0 : i32
    return %arg0, %c0_i32, %c0_i32_0 : i32, i32, i32
  }
  func.func @transform_4(%arg0: i32, %arg1: i32) -> (i32, i32) {
    %c0_i32 = arith.constant 0 : i32
    %c0_i32_0 = arith.constant 0 : i32
    %c0_i32_1 = arith.constant 0 : i32
    return %c0_i32, %c0_i32_0 : i32, i32
  }
  func.func @transform_5(%arg0: i32, %arg1: i32) -> (i32, i32) {
    %c0_i32 = arith.constant 0 : i32
    %c0_i32_0 = arith.constant 0 : i32
    %c0_i32_1 = arith.constant 0 : i32
    return %c0_i32, %c0_i32_0 : i32, i32
  }
  func.func @transform_6(%arg0: i32, %arg1: i32) -> (i32, i32) {
    %c0_i32 = arith.constant 0 : i32
    %c0_i32_0 = arith.constant 0 : i32
    %c0_i32_1 = arith.constant 0 : i32
    return %c0_i32, %c0_i32_0 : i32, i32
  }
  func.func @transform_7(%arg0: i32, %arg1: i32) -> (i32, i32) {
    %c0_i32 = arith.constant 0 : i32
    %c0_i32_0 = arith.constant 0 : i32
    %c0_i32_1 = arith.constant 0 : i32
    return %c0_i32, %c0_i32_0 : i32, i32
  }
  func.func @transform_8(%arg0: i32, %arg1: i32) -> (i32, i32) {
    %c0_i32 = arith.constant 0 : i32
    %c0_i32_0 = arith.constant 0 : i32
    %c0_i32_1 = arith.constant 0 : i32
    return %c0_i32, %c0_i32_0 : i32, i32
  }
  func.func @transform_9(%arg0: i32, %arg1: i32) -> (i32, i32) {
    %c0_i32 = arith.constant 0 : i32
    %c0_i32_0 = arith.constant 0 : i32
    %c0_i32_1 = arith.constant 0 : i32
    return %c0_i32, %c0_i32_0 : i32, i32
  }
  func.func @transform_10(%arg0: i32, %arg1: i32) -> (i32, i32) {
    %c0_i32 = arith.constant 0 : i32
    %c0_i32_0 = arith.constant 0 : i32
    %c0_i32_1 = arith.constant 0 : i32
    return %c0_i32, %c0_i32_0 : i32, i32
  }
  func.func @transform_11(%arg0: i32, %arg1: i32) -> (i32, i32) {
    %c0_i32 = arith.constant 0 : i32
    %c0_i32_0 = arith.constant 0 : i32
    %c0_i32_1 = arith.constant 0 : i32
    return %c0_i32, %c0_i32_0 : i32, i32
  }
  func.func @transform_12(%arg0: i32, %arg1: i32) -> (i32, i32, i32) {
    %c0_i32 = arith.constant 0 : i32
    %c0_i32_0 = arith.constant 0 : i32
    return %arg0, %arg1, %c0_i32 : i32, i32, i32
  }
}

module attributes {stable_mosaic.version = 11 : i64} {
  func.func @_mha_kernel(%arg0: i32, %arg1: i32, %arg2: memref<1x8x32xbf16, #tpu.memory_space<vmem>>, %arg3: memref<1x8x32xbf16, #tpu.memory_space<vmem>>, %arg4: memref<1x8x32xbf16, #tpu.memory_space<vmem>>, %arg5: memref<1x1x8xi32, #tpu.memory_space<vmem>>, %arg6: memref<32x32xbf16, #tpu.memory_space<vmem>>, %arg7: memref<1x32xf32, #tpu.memory_space<vmem>>, %arg8: memref<32x32xbf16, #tpu.memory_space<vmem>>, %arg9: memref<1x32xf32, #tpu.memory_space<vmem>>, %arg10: memref<32x32xbf16, #tpu.memory_space<vmem>>, %arg11: memref<1x32xf32, #tpu.memory_space<vmem>>, %arg12: memref<32x32xbf16, #tpu.memory_space<vmem>>, %arg13: memref<1x32xf32, #tpu.memory_space<vmem>>, %arg14: memref<1x8x32xf32, #tpu.memory_space<vmem>>, %arg15: memref<8x32xbf16, #tpu.memory_space<vmem>>, %arg16: memref<8x32xbf16, #tpu.memory_space<vmem>>, %arg17: memref<8x32xbf16, #tpu.memory_space<vmem>>) attributes {dimension_semantics = [#tpu.dimension_semantics<parallel>, #tpu.dimension_semantics<arbitrary>], iteration_bounds = array<i64: 2, 1>, scalar_prefetch = 0 : i64, scratch_operands = 3 : i64, tpu.core_type = #tpu.core_type<tc>, window_params = [{transform_indices = @transform_0, window_bounds = array<i64: 1, 8, 32>}, {transform_indices = @transform_1, window_bounds = array<i64: 1, 8, 32>}, {transform_indices = @transform_2, window_bounds = array<i64: 1, 8, 32>}, {transform_indices = @transform_3, window_bounds = array<i64: 1, 1, 8>}, {pipeline_mode = #tpu.pipeline_mode<synchronous>, transform_indices = @transform_4, window_bounds = array<i64: 32, 32>}, {pipeline_mode = #tpu.pipeline_mode<synchronous>, transform_indices = @transform_5, window_bounds = array<i64: 1, 32>}, {pipeline_mode = #tpu.pipeline_mode<synchronous>, transform_indices = @transform_6, window_bounds = array<i64: 32, 32>}, {pipeline_mode = #tpu.pipeline_mode<synchronous>, transform_indices = @transform_7, window_bounds = array<i64: 1, 32>}, {pipeline_mode = #tpu.pipeline_mode<synchronous>, transform_indices = @transform_8, window_bounds = array<i64: 32, 32>}, {pipeline_mode = #tpu.pipeline_mode<synchronous>, transform_indices = @transform_9, window_bounds = array<i64: 1, 32>}, {pipeline_mode = #tpu.pipeline_mode<synchronous>, transform_indices = @transform_10, window_bounds = array<i64: 32, 32>}, {pipeline_mode = #tpu.pipeline_mode<synchronous>, transform_indices = @transform_11, window_bounds = array<i64: 1, 32>}, {transform_indices = @transform_12, window_bounds = array<i64: 1, 8, 32>}]} {
    %c0_i32 = arith.constant 0 : i32
    %0 = arith.cmpi eq, %arg1, %c0_i32 : i32
    %1 = arith.extui %0 : i1 to i32
    %c0_i32_0 = arith.constant 0 : i32
    %2 = arith.cmpi ne, %1, %c0_i32_0 : i32
    scf.if %2 {
      %c0_66 = arith.constant 0 : index
      %c0_67 = arith.constant 0 : index
      %c0_68 = arith.constant 0 : index
      %128 = vector.load %arg3[%c0_66, %c0_67, %c0_68] : memref<1x8x32xbf16, #tpu.memory_space<vmem>>, vector<1x8x32xbf16>
      %129 = vector.shape_cast %128 : vector<1x8x32xbf16> to vector<8x32xbf16>
      %c0_69 = arith.constant 0 : index
      %c0_70 = arith.constant 0 : index
      %130 = vector.load %arg8[%c0_69, %c0_70] : memref<32x32xbf16, #tpu.memory_space<vmem>>, vector<32x32xbf16>
      %cst_71 = arith.constant dense<0.000000e+00> : vector<8x32xf32>
      %131 = tpu.matmul %129, %130, %cst_71 {dimension_numbers = #tpu.dot_dimension_numbers<[1], [0], [0], [1], [0, 0, 1, 1], [], []>} : vector<8x32xbf16>, vector<32x32xbf16>, vector<8x32xf32> -> vector<8x32xf32>
      %c0_72 = arith.constant 0 : index
      %c0_73 = arith.constant 0 : index
      %132 = vector.load %arg9[%c0_72, %c0_73] : memref<1x32xf32, #tpu.memory_space<vmem>>, vector<1x32xf32>
      %133 = vector.broadcast %132 : vector<1x32xf32> to vector<8x32xf32>
      %134 = arith.addf %131, %133 : vector<8x32xf32>
      %135 = arith.truncf %134 : vector<8x32xf32> to vector<8x32xbf16>
      %c0_74 = arith.constant 0 : index
      %c0_75 = arith.constant 0 : index
      %136 = vector.load %arg15[%c0_74, %c0_75] : memref<8x32xbf16, #tpu.memory_space<vmem>>, vector<8x32xbf16>
      tpu.vector_store %arg15[%c0_74, %c0_75], %135 {strides = array<i32>} : memref<8x32xbf16, #tpu.memory_space<vmem>>, vector<8x32xbf16>,
      %c0_76 = arith.constant 0 : index
      %c0_77 = arith.constant 0 : index
      %c0_78 = arith.constant 0 : index
      %137 = vector.load %arg4[%c0_76, %c0_77, %c0_78] : memref<1x8x32xbf16, #tpu.memory_space<vmem>>, vector<1x8x32xbf16>
      %138 = vector.shape_cast %137 : vector<1x8x32xbf16> to vector<8x32xbf16>
      %c0_79 = arith.constant 0 : index
      %c0_80 = arith.constant 0 : index
      %139 = vector.load %arg10[%c0_79, %c0_80] : memref<32x32xbf16, #tpu.memory_space<vmem>>, vector<32x32xbf16>
      %cst_81 = arith.constant dense<0.000000e+00> : vector<8x32xf32>
      %140 = tpu.matmul %138, %139, %cst_81 {dimension_numbers = #tpu.dot_dimension_numbers<[1], [0], [0], [1], [0, 0, 1, 1], [], []>} : vector<8x32xbf16>, vector<32x32xbf16>, vector<8x32xf32> -> vector<8x32xf32>
      %c0_82 = arith.constant 0 : index
      %c0_83 = arith.constant 0 : index
      %141 = vector.load %arg11[%c0_82, %c0_83] : memref<1x32xf32, #tpu.memory_space<vmem>>, vector<1x32xf32>
      %142 = vector.broadcast %141 : vector<1x32xf32> to vector<8x32xf32>
      %143 = arith.addf %140, %142 : vector<8x32xf32>
      %144 = arith.truncf %143 : vector<8x32xf32> to vector<8x32xbf16>
      %c0_84 = arith.constant 0 : index
      %c0_85 = arith.constant 0 : index
      %145 = vector.load %arg16[%c0_84, %c0_85] : memref<8x32xbf16, #tpu.memory_space<vmem>>, vector<8x32xbf16>
      tpu.vector_store %arg16[%c0_84, %c0_85], %144 {strides = array<i32>} : memref<8x32xbf16, #tpu.memory_space<vmem>>, vector<8x32xbf16>,
    } else {
    }
    %c0 = arith.constant 0 : index
    %c0_1 = arith.constant 0 : index
    %c0_2 = arith.constant 0 : index
    %3 = vector.load %arg2[%c0, %c0_1, %c0_2] : memref<1x8x32xbf16, #tpu.memory_space<vmem>>, vector<1x8x32xbf16>
    %4 = vector.shape_cast %3 : vector<1x8x32xbf16> to vector<8x32xbf16>
    %c0_3 = arith.constant 0 : index
    %c0_4 = arith.constant 0 : index
    %5 = vector.load %arg6[%c0_3, %c0_4] : memref<32x32xbf16, #tpu.memory_space<vmem>>, vector<32x32xbf16>
    %cst = arith.constant dense<0.000000e+00> : vector<8x32xf32>
    %6 = tpu.matmul %4, %5, %cst {dimension_numbers = #tpu.dot_dimension_numbers<[1], [0], [0], [1], [0, 0, 1, 1], [], []>} : vector<8x32xbf16>, vector<32x32xbf16>, vector<8x32xf32> -> vector<8x32xf32>
    %c0_5 = arith.constant 0 : index
    %c0_6 = arith.constant 0 : index
    %7 = vector.load %arg7[%c0_5, %c0_6] : memref<1x32xf32, #tpu.memory_space<vmem>>, vector<1x32xf32>
    %8 = vector.broadcast %7 : vector<1x32xf32> to vector<8x32xf32>
    %9 = arith.addf %6, %8 : vector<8x32xf32>
    %10 = arith.truncf %9 : vector<8x32xf32> to vector<8x32xbf16>
    %c0_7 = arith.constant 0 : index
    %c0_8 = arith.constant 0 : index
    %c0_9 = arith.constant 0 : index
    %11 = vector.load %arg5[%c0_7, %c0_8, %c0_9] : memref<1x1x8xi32, #tpu.memory_space<vmem>>, vector<1x1x8xi32>
    %12 = vector.shape_cast %11 : vector<1x1x8xi32> to vector<1x8xi32>
    %c0_i32_10 = arith.constant 0 : i32
    %13 = vector.broadcast %c0_i32_10 : i32 to vector<1x8xi32>
    %14 = arith.cmpi eq, %12, %13 : vector<1x8xi32>
    %15 = vector.extract_strided_slice %10 {offsets = [0, 0], sizes = [8, 8], strides = [1, 1]} : vector<8x32xbf16> to vector<8x8xbf16>
    %c0_11 = arith.constant 0 : index
    %c0_12 = arith.constant 0 : index
    %16 = vector.load %arg15[%c0_11, %c0_12] : memref<8x32xbf16, #tpu.memory_space<vmem>>, vector<8x8xbf16>
    %c0_13 = arith.constant 0 : index
    %c0_14 = arith.constant 0 : index
    %17 = vector.load %arg16[%c0_13, %c0_14] : memref<8x32xbf16, #tpu.memory_space<vmem>>, vector<8x8xbf16>
    %cst_15 = arith.constant dense<0.000000e+00> : vector<8x8xf32>
    %18 = tpu.matmul %15, %16, %cst_15 {dimension_numbers = #tpu.dot_dimension_numbers<[1], [1], [0], [0], [0, 0, 1, 0], [], []>} : vector<8x8xbf16>, vector<8x8xbf16>, vector<8x8xf32> -> vector<8x8xf32>
    %cst_16 = arith.constant -3.40282347E+38 : f32
    %19 = vector.shape_cast %14 : vector<1x8xi1> to vector<1x8xi1>
    %20 = vector.broadcast %19 : vector<1x8xi1> to vector<8x8xi1>
    %21 = vector.broadcast %cst_16 : f32 to vector<8x8xf32>
    %22 = arith.select %20, %21, %18 : vector<8x8xi1>, vector<8x8xf32>
    %cst_17 = arith.constant dense<0xFF800000> : vector<8xf32>
    %23 = vector.multi_reduction <maximumf>, %22, %cst_17 [1] : vector<8x8xf32> to vector<8xf32>
    %24 = vector.shape_cast %23 : vector<8xf32> to vector<8x1xf32>
    %25 = vector.broadcast %24 : vector<8x1xf32> to vector<8x8xf32>
    %26 = arith.subf %22, %25 : vector<8x8xf32>
    %27 = math.exp %26 : vector<8x8xf32>
    %cst_18 = arith.constant dense<0.000000e+00> : vector<8xf32>
    %28 = vector.multi_reduction <add>, %27, %cst_18 [1] : vector<8x8xf32> to vector<8xf32>
    %29 = vector.shape_cast %28 : vector<8xf32> to vector<8x1xf32>
    %30 = tpu.reciprocal %29 {approx = true} : vector<8x1xf32> -> vector<8x1xf32>
    %31 = vector.broadcast %30 : vector<8x1xf32> to vector<8x8xf32>
    %32 = arith.mulf %27, %31 : vector<8x8xf32>
    %cst_19 = arith.constant 0.000000e+00 : f32
    %33 = vector.shape_cast %14 : vector<1x8xi1> to vector<1x8xi1>
    %34 = vector.broadcast %33 : vector<1x8xi1> to vector<8x8xi1>
    %35 = vector.broadcast %cst_19 : f32 to vector<8x8xf32>
    %36 = arith.select %34, %35, %32 : vector<8x8xi1>, vector<8x8xf32>
    %37 = arith.truncf %36 : vector<8x8xf32> to vector<8x8xbf16>
    %cst_20 = arith.constant dense<0.000000e+00> : vector<8x8xf32>
    %38 = tpu.matmul %37, %17, %cst_20 {dimension_numbers = #tpu.dot_dimension_numbers<[1], [0], [0], [1], [0, 0, 1, 1], [], []>} : vector<8x8xbf16>, vector<8x8xbf16>, vector<8x8xf32> -> vector<8x8xf32>
    %39 = arith.truncf %38 : vector<8x8xf32> to vector<8x8xbf16>
    %c0_21 = arith.constant 0 : index
    %c0_22 = arith.constant 0 : index
    %40 = vector.load %arg17[%c0_21, %c0_22] : memref<8x32xbf16, #tpu.memory_space<vmem>>, vector<8x8xbf16>
    tpu.vector_store %arg17[%c0_21, %c0_22], %39 {strides = array<i32>} : memref<8x32xbf16, #tpu.memory_space<vmem>>, vector<8x8xbf16>,
    %41 = vector.extract_strided_slice %10 {offsets = [0, 8], sizes = [8, 8], strides = [1, 1]} : vector<8x32xbf16> to vector<8x8xbf16>
    %c0_23 = arith.constant 0 : index
    %c8 = arith.constant 8 : index
    %42 = vector.load %arg15[%c0_23, %c8] : memref<8x32xbf16, #tpu.memory_space<vmem>>, vector<8x8xbf16>
    %c0_24 = arith.constant 0 : index
    %c8_25 = arith.constant 8 : index
    %43 = vector.load %arg16[%c0_24, %c8_25] : memref<8x32xbf16, #tpu.memory_space<vmem>>, vector<8x8xbf16>
    %cst_26 = arith.constant dense<0.000000e+00> : vector<8x8xf32>
    %44 = tpu.matmul %41, %42, %cst_26 {dimension_numbers = #tpu.dot_dimension_numbers<[1], [1], [0], [0], [0, 0, 1, 0], [], []>} : vector<8x8xbf16>, vector<8x8xbf16>, vector<8x8xf32> -> vector<8x8xf32>
    %cst_27 = arith.constant -3.40282347E+38 : f32
    %45 = vector.shape_cast %14 : vector<1x8xi1> to vector<1x8xi1>
    %46 = vector.broadcast %45 : vector<1x8xi1> to vector<8x8xi1>
    %47 = vector.broadcast %cst_27 : f32 to vector<8x8xf32>
    %48 = arith.select %46, %47, %44 : vector<8x8xi1>, vector<8x8xf32>
    %cst_28 = arith.constant dense<0xFF800000> : vector<8xf32>
    %49 = vector.multi_reduction <maximumf>, %48, %cst_28 [1] : vector<8x8xf32> to vector<8xf32>
    %50 = vector.shape_cast %49 : vector<8xf32> to vector<8x1xf32>
    %51 = vector.broadcast %50 : vector<8x1xf32> to vector<8x8xf32>
    %52 = arith.subf %48, %51 : vector<8x8xf32>
    %53 = math.exp %52 : vector<8x8xf32>
    %cst_29 = arith.constant dense<0.000000e+00> : vector<8xf32>
    %54 = vector.multi_reduction <add>, %53, %cst_29 [1] : vector<8x8xf32> to vector<8xf32>
    %55 = vector.shape_cast %54 : vector<8xf32> to vector<8x1xf32>
    %56 = tpu.reciprocal %55 {approx = true} : vector<8x1xf32> -> vector<8x1xf32>
    %57 = vector.broadcast %56 : vector<8x1xf32> to vector<8x8xf32>
    %58 = arith.mulf %53, %57 : vector<8x8xf32>
    %cst_30 = arith.constant 0.000000e+00 : f32
    %59 = vector.shape_cast %14 : vector<1x8xi1> to vector<1x8xi1>
    %60 = vector.broadcast %59 : vector<1x8xi1> to vector<8x8xi1>
    %61 = vector.broadcast %cst_30 : f32 to vector<8x8xf32>
    %62 = arith.select %60, %61, %58 : vector<8x8xi1>, vector<8x8xf32>
    %63 = arith.truncf %62 : vector<8x8xf32> to vector<8x8xbf16>
    %cst_31 = arith.constant dense<0.000000e+00> : vector<8x8xf32>
    %64 = tpu.matmul %63, %43, %cst_31 {dimension_numbers = #tpu.dot_dimension_numbers<[1], [0], [0], [1], [0, 0, 1, 1], [], []>} : vector<8x8xbf16>, vector<8x8xbf16>, vector<8x8xf32> -> vector<8x8xf32>
    %65 = arith.truncf %64 : vector<8x8xf32> to vector<8x8xbf16>
    %c0_32 = arith.constant 0 : index
    %c8_33 = arith.constant 8 : index
    %66 = vector.load %arg17[%c0_32, %c8_33] : memref<8x32xbf16, #tpu.memory_space<vmem>>, vector<8x8xbf16>
    tpu.vector_store %arg17[%c0_32, %c8_33], %65 {strides = array<i32>} : memref<8x32xbf16, #tpu.memory_space<vmem>>, vector<8x8xbf16>,
    %67 = vector.extract_strided_slice %10 {offsets = [0, 16], sizes = [8, 8], strides = [1, 1]} : vector<8x32xbf16> to vector<8x8xbf16>
    %c0_34 = arith.constant 0 : index
    %c16 = arith.constant 16 : index
    %68 = vector.load %arg15[%c0_34, %c16] : memref<8x32xbf16, #tpu.memory_space<vmem>>, vector<8x8xbf16>
    %c0_35 = arith.constant 0 : index
    %c16_36 = arith.constant 16 : index
    %69 = vector.load %arg16[%c0_35, %c16_36] : memref<8x32xbf16, #tpu.memory_space<vmem>>, vector<8x8xbf16>
    %cst_37 = arith.constant dense<0.000000e+00> : vector<8x8xf32>
    %70 = tpu.matmul %67, %68, %cst_37 {dimension_numbers = #tpu.dot_dimension_numbers<[1], [1], [0], [0], [0, 0, 1, 0], [], []>} : vector<8x8xbf16>, vector<8x8xbf16>, vector<8x8xf32> -> vector<8x8xf32>
    %cst_38 = arith.constant -3.40282347E+38 : f32
    %71 = vector.shape_cast %14 : vector<1x8xi1> to vector<1x8xi1>
    %72 = vector.broadcast %71 : vector<1x8xi1> to vector<8x8xi1>
    %73 = vector.broadcast %cst_38 : f32 to vector<8x8xf32>
    %74 = arith.select %72, %73, %70 : vector<8x8xi1>, vector<8x8xf32>
    %cst_39 = arith.constant dense<0xFF800000> : vector<8xf32>
    %75 = vector.multi_reduction <maximumf>, %74, %cst_39 [1] : vector<8x8xf32> to vector<8xf32>
    %76 = vector.shape_cast %75 : vector<8xf32> to vector<8x1xf32>
    %77 = vector.broadcast %76 : vector<8x1xf32> to vector<8x8xf32>
    %78 = arith.subf %74, %77 : vector<8x8xf32>
    %79 = math.exp %78 : vector<8x8xf32>
    %cst_40 = arith.constant dense<0.000000e+00> : vector<8xf32>
    %80 = vector.multi_reduction <add>, %79, %cst_40 [1] : vector<8x8xf32> to vector<8xf32>
    %81 = vector.shape_cast %80 : vector<8xf32> to vector<8x1xf32>
    %82 = tpu.reciprocal %81 {approx = true} : vector<8x1xf32> -> vector<8x1xf32>
    %83 = vector.broadcast %82 : vector<8x1xf32> to vector<8x8xf32>
    %84 = arith.mulf %79, %83 : vector<8x8xf32>
    %cst_41 = arith.constant 0.000000e+00 : f32
    %85 = vector.shape_cast %14 : vector<1x8xi1> to vector<1x8xi1>
    %86 = vector.broadcast %85 : vector<1x8xi1> to vector<8x8xi1>
    %87 = vector.broadcast %cst_41 : f32 to vector<8x8xf32>
    %88 = arith.select %86, %87, %84 : vector<8x8xi1>, vector<8x8xf32>
    %89 = arith.truncf %88 : vector<8x8xf32> to vector<8x8xbf16>
    %cst_42 = arith.constant dense<0.000000e+00> : vector<8x8xf32>
    %90 = tpu.matmul %89, %69, %cst_42 {dimension_numbers = #tpu.dot_dimension_numbers<[1], [0], [0], [1], [0, 0, 1, 1], [], []>} : vector<8x8xbf16>, vector<8x8xbf16>, vector<8x8xf32> -> vector<8x8xf32>
    %91 = arith.truncf %90 : vector<8x8xf32> to vector<8x8xbf16>
    %c0_43 = arith.constant 0 : index
    %c16_44 = arith.constant 16 : index
    %92 = vector.load %arg17[%c0_43, %c16_44] : memref<8x32xbf16, #tpu.memory_space<vmem>>, vector<8x8xbf16>
    tpu.vector_store %arg17[%c0_43, %c16_44], %91 {strides = array<i32>} : memref<8x32xbf16, #tpu.memory_space<vmem>>, vector<8x8xbf16>,
    %93 = vector.extract_strided_slice %10 {offsets = [0, 24], sizes = [8, 8], strides = [1, 1]} : vector<8x32xbf16> to vector<8x8xbf16>
    %c0_45 = arith.constant 0 : index
    %c24 = arith.constant 24 : index
    %94 = vector.load %arg15[%c0_45, %c24] : memref<8x32xbf16, #tpu.memory_space<vmem>>, vector<8x8xbf16>
    %c0_46 = arith.constant 0 : index
    %c24_47 = arith.constant 24 : index
    %95 = vector.load %arg16[%c0_46, %c24_47] : memref<8x32xbf16, #tpu.memory_space<vmem>>, vector<8x8xbf16>
    %cst_48 = arith.constant dense<0.000000e+00> : vector<8x8xf32>
    %96 = tpu.matmul %93, %94, %cst_48 {dimension_numbers = #tpu.dot_dimension_numbers<[1], [1], [0], [0], [0, 0, 1, 0], [], []>} : vector<8x8xbf16>, vector<8x8xbf16>, vector<8x8xf32> -> vector<8x8xf32>
    %cst_49 = arith.constant -3.40282347E+38 : f32
    %97 = vector.shape_cast %14 : vector<1x8xi1> to vector<1x8xi1>
    %98 = vector.broadcast %97 : vector<1x8xi1> to vector<8x8xi1>
    %99 = vector.broadcast %cst_49 : f32 to vector<8x8xf32>
    %100 = arith.select %98, %99, %96 : vector<8x8xi1>, vector<8x8xf32>
    %cst_50 = arith.constant dense<0xFF800000> : vector<8xf32>
    %101 = vector.multi_reduction <maximumf>, %100, %cst_50 [1] : vector<8x8xf32> to vector<8xf32>
    %102 = vector.shape_cast %101 : vector<8xf32> to vector<8x1xf32>
    %103 = vector.broadcast %102 : vector<8x1xf32> to vector<8x8xf32>
    %104 = arith.subf %100, %103 : vector<8x8xf32>
    %105 = math.exp %104 : vector<8x8xf32>
    %cst_51 = arith.constant dense<0.000000e+00> : vector<8xf32>
    %106 = vector.multi_reduction <add>, %105, %cst_51 [1] : vector<8x8xf32> to vector<8xf32>
    %107 = vector.shape_cast %106 : vector<8xf32> to vector<8x1xf32>
    %108 = tpu.reciprocal %107 {approx = true} : vector<8x1xf32> -> vector<8x1xf32>
    %109 = vector.broadcast %108 : vector<8x1xf32> to vector<8x8xf32>
    %110 = arith.mulf %105, %109 : vector<8x8xf32>
    %cst_52 = arith.constant 0.000000e+00 : f32
    %111 = vector.shape_cast %14 : vector<1x8xi1> to vector<1x8xi1>
    %112 = vector.broadcast %111 : vector<1x8xi1> to vector<8x8xi1>
    %113 = vector.broadcast %cst_52 : f32 to vector<8x8xf32>
    %114 = arith.select %112, %113, %110 : vector<8x8xi1>, vector<8x8xf32>
    %115 = arith.truncf %114 : vector<8x8xf32> to vector<8x8xbf16>
    %cst_53 = arith.constant dense<0.000000e+00> : vector<8x8xf32>
    %116 = tpu.matmul %115, %95, %cst_53 {dimension_numbers = #tpu.dot_dimension_numbers<[1], [0], [0], [1], [0, 0, 1, 1], [], []>} : vector<8x8xbf16>, vector<8x8xbf16>, vector<8x8xf32> -> vector<8x8xf32>
    %117 = arith.truncf %116 : vector<8x8xf32> to vector<8x8xbf16>
    %c0_54 = arith.constant 0 : index
    %c24_55 = arith.constant 24 : index
    %118 = vector.load %arg17[%c0_54, %c24_55] : memref<8x32xbf16, #tpu.memory_space<vmem>>, vector<8x8xbf16>
    tpu.vector_store %arg17[%c0_54, %c24_55], %117 {strides = array<i32>} : memref<8x32xbf16, #tpu.memory_space<vmem>>, vector<8x8xbf16>,
    %c0_56 = arith.constant 0 : index
    %c0_57 = arith.constant 0 : index
    %119 = vector.load %arg17[%c0_56, %c0_57] : memref<8x32xbf16, #tpu.memory_space<vmem>>, vector<8x32xbf16>
    %c0_58 = arith.constant 0 : index
    %c0_59 = arith.constant 0 : index
    %120 = vector.load %arg12[%c0_58, %c0_59] : memref<32x32xbf16, #tpu.memory_space<vmem>>, vector<32x32xbf16>
    %cst_60 = arith.constant dense<0.000000e+00> : vector<8x32xf32>
    %121 = tpu.matmul %119, %120, %cst_60 {dimension_numbers = #tpu.dot_dimension_numbers<[1], [0], [0], [1], [0, 0, 1, 1], [], []>} : vector<8x32xbf16>, vector<32x32xbf16>, vector<8x32xf32> -> vector<8x32xf32>
    %c0_61 = arith.constant 0 : index
    %c0_62 = arith.constant 0 : index
    %122 = vector.load %arg13[%c0_61, %c0_62] : memref<1x32xf32, #tpu.memory_space<vmem>>, vector<1x32xf32>
    %123 = vector.broadcast %122 : vector<1x32xf32> to vector<8x32xf32>
    %124 = arith.addf %121, %123 : vector<8x32xf32>
    %c0_63 = arith.constant 0 : index
    %c0_64 = arith.constant 0 : index
    %c0_65 = arith.constant 0 : index
    %125 = vector.load %arg14[%c0_63, %c0_64, %c0_65] : memref<1x8x32xf32, #tpu.memory_space<vmem>>, vector<1x8x32xf32>
    %126 = vector.shape_cast %125 : vector<1x8x32xf32> to vector<8x32xf32>
    %127 = vector.shape_cast %124 : vector<8x32xf32> to vector<1x8x32xf32>
    tpu.vector_store %arg14[%c0_63, %c0_64, %c0_65], %127 {strides = array<i32>} : memref<1x8x32xf32, #tpu.memory_space<vmem>>, vector<1x8x32xf32>,
    return
  }
  func.func @transform_0(%arg0: i32, %arg1: i32) -> (i32, i32, i32) {
    %c0_i32 = arith.constant 0 : i32
    %c0_i32_0 = arith.constant 0 : i32
    return %arg0, %arg1, %c0_i32 : i32, i32, i32
  }
  func.func @transform_1(%arg0: i32, %arg1: i32) -> (i32, i32, i32) {
    %c0_i32 = arith.constant 0 : i32
    %c0_i32_0 = arith.constant 0 : i32
    %c0_i32_1 = arith.constant 0 : i32
    return %arg0, %c0_i32, %c0_i32_0 : i32, i32, i32
  }
  func.func @transform_2(%arg0: i32, %arg1: i32) -> (i32, i32, i32) {
    %c0_i32 = arith.constant 0 : i32
    %c0_i32_0 = arith.constant 0 : i32
    %c0_i32_1 = arith.constant 0 : i32
    return %arg0, %c0_i32, %c0_i32_0 : i32, i32, i32
  }
  func.func @transform_3(%arg0: i32, %arg1: i32) -> (i32, i32, i32) {
    %c0_i32 = arith.constant 0 : i32
    %c0_i32_0 = arith.constant 0 : i32
    %c0_i32_1 = arith.constant 0 : i32
    return %arg0, %c0_i32, %c0_i32_0 : i32, i32, i32
  }
  func.func @transform_4(%arg0: i32, %arg1: i32) -> (i32, i32) {
    %c0_i32 = arith.constant 0 : i32
    %c0_i32_0 = arith.constant 0 : i32
    %c0_i32_1 = arith.constant 0 : i32
    return %c0_i32, %c0_i32_0 : i32, i32
  }
  func.func @transform_5(%arg0: i32, %arg1: i32) -> (i32, i32) {
    %c0_i32 = arith.constant 0 : i32
    %c0_i32_0 = arith.constant 0 : i32
    %c0_i32_1 = arith.constant 0 : i32
    return %c0_i32, %c0_i32_0 : i32, i32
  }
  func.func @transform_6(%arg0: i32, %arg1: i32) -> (i32, i32) {
    %c0_i32 = arith.constant 0 : i32
    %c0_i32_0 = arith.constant 0 : i32
    %c0_i32_1 = arith.constant 0 : i32
    return %c0_i32, %c0_i32_0 : i32, i32
  }
  func.func @transform_7(%arg0: i32, %arg1: i32) -> (i32, i32) {
    %c0_i32 = arith.constant 0 : i32
    %c0_i32_0 = arith.constant 0 : i32
    %c0_i32_1 = arith.constant 0 : i32
    return %c0_i32, %c0_i32_0 : i32, i32
  }
  func.func @transform_8(%arg0: i32, %arg1: i32) -> (i32, i32) {
    %c0_i32 = arith.constant 0 : i32
    %c0_i32_0 = arith.constant 0 : i32
    %c0_i32_1 = arith.constant 0 : i32
    return %c0_i32, %c0_i32_0 : i32, i32
  }
  func.func @transform_9(%arg0: i32, %arg1: i32) -> (i32, i32) {
    %c0_i32 = arith.constant 0 : i32
    %c0_i32_0 = arith.constant 0 : i32
    %c0_i32_1 = arith.constant 0 : i32
    return %c0_i32, %c0_i32_0 : i32, i32
  }
  func.func @transform_10(%arg0: i32, %arg1: i32) -> (i32, i32) {
    %c0_i32 = arith.constant 0 : i32
    %c0_i32_0 = arith.constant 0 : i32
    %c0_i32_1 = arith.constant 0 : i32
    return %c0_i32, %c0_i32_0 : i32, i32
  }
  func.func @transform_11(%arg0: i32, %arg1: i32) -> (i32, i32) {
    %c0_i32 = arith.constant 0 : i32
    %c0_i32_0 = arith.constant 0 : i32
    %c0_i32_1 = arith.constant 0 : i32
    return %c0_i32, %c0_i32_0 : i32, i32
  }
  func.func @transform_12(%arg0: i32, %arg1: i32) -> (i32, i32, i32) {
    %c0_i32 = arith.constant 0 : i32
    %c0_i32_0 = arith.constant 0 : i32
    return %arg0, %arg1, %c0_i32 : i32, i32, i32
  }
}

</mosaic_0001>

<bundles_post_ra>
// kernel: tpu_custom_call.1
= control target key start
LH: loop header
LB: loop body
LE: loop exit
PB: predicated region body
PF: predicated region fallthrough
CT: control target
= control target key end

     0   :  { %s2773_s0 = inlined_call_operand.hbm [shape: bf16[2,8,32], index: 0, kind: input, shape index: {}]   ;;  %s2774_s1 = inlined_call_operand.hbm [shape: bf16[2,8,32], index: 1, kind: input, shape index: {}]   ;;  %s2775_s2 = inlined_call_operand.hbm [shape: bf16[2,8,32], index: 2, kind: input, shape index: {}]   ;;  %s2776_s3 = inlined_call_operand.vmem [shape: s32[2,1,8], index: 3, kind: input, shape index: {}]   ;;  %s2777_s4 = inlined_call_operand.hbm [shape: bf16[32,32], index: 4, kind: input, shape index: {}]   ;;  %s2778_s5 = inlined_call_operand.hbm [shape: f32[1,32], index: 5, kind: input, shape index: {}]   ;;  %s2779_s6 = inlined_call_operand.hbm [shape: bf16[32,32], index: 6, kind: input, shape index: {}]   ;;  %s2780_s7 = inlined_call_operand.hbm [shape: f32[1,32], index: 7, kind: input, shape index: {}]   ;;  %s2781_s8 = inlined_call_operand.hbm [shape: bf16[32,32], index: 8, kind: input, shape index: {}]   ;;  %s2782_s9 = inlined_call_operand.hbm [shape: f32[1,32], index: 9, kind: input, shape index: {}]   ;;  %s2783_s10 = inlined_call_operand.vmem [shape: bf16[32,32], index: 10, kind: input, shape index: {}]   ;;  %s2784_s11 = inlined_call_operand.vmem [shape: f32[1,32], index: 11, kind: input, shape index: {}]   ;;  %s2785_s12 = inlined_call_operand.hbm [shape: f32[2,8,32], index: 12, kind: output, shape index: {}]  }
   0x1   :  { %2803 = sst [smem:[#allocation34_spill]] %s2777_s4 }
   0x2   :  { %2804 = sst [smem:[#allocation35_spill]] %s2779_s6 }
   0x3   :  { %2805 = sst [smem:[#allocation36_spill]] %s2781_s8 }
   0x4   :  { %2806 = sst [smem:[#allocation37_spill]] %s2784_s11 }
   0x5   :  { %2807 = sst [smem:[#allocation38_spill]] %s2785_s12 }
   0x6   :  { %17 = vsyncpa [#allocation6], 0 }
   0x7   :  { %19 = vsyncpa [#allocation6 + $0x1], 0 }
   0x8   :  { %20 = vsyncpa [#allocation9], 0 }
   0x9   :  { %22 = vsyncpa [#allocation9 + $0x1], 0 }
   0xa   :  { %23 = vsyncpa [#allocation12], 0 }
   0xb   :  { %24 = vsyncpa [#allocation15], 0 }
   0xc   :  { %25 = vsyncpa [#allocation18], 0 }
   0xd   :  { %26 = vsyncpa [#allocation7], 0 }
   0xe   :  { %28 = vsyncpa [#allocation7 + $0x1], 0  ;;  %s2380_s21 = smov 0   ;;  %s2382_s22 = smov 0  }
   0xf   :  { %s2384_s23 = smov 0   ;;  %s2386_s24 = smov 0  }
  0x10   :  { %s2388_s25 = smov 0   ;;  %s2390_s26 = smov 0  }
  0x11 LB: > { %2808 = sst [smem:[#allocation27_spill]] %s2272_s21  ;;  %s2411_s27 = sadd.s32 4294967295, %s2292_s26   ;;  %s2292_s26 = sphi %s2390_s26, %s34_s26   ;;  %s2288_s25 = sphi %s2388_s25, %s2850_s25   ;;  %s2284_s24 = sphi %s2386_s24, %s2849_s24   ;;  %s2280_s23 = sphi %s2384_s23, %s2853_s23   ;;  %s2276_s22 = sphi %s2382_s22, %s2852_s22   ;;  %s2272_s21 = sphi %s2380_s21, %s2851_s21  }
  0x12   : > { %2809 = sst [smem:[#allocation28_spill]] %s2288_s25  ;;  %p1609_p0 = scmp.ge.s32.totalorder %s2292_s26, 1 }
  0x13   : > { %2810 = sst [smem:[#allocation29_spill]] %s2292_s26  ;;  %p2787_p1 = scmp.eq.s32.totalorder %s2411_s27, 0 }
  0x14   : > { %p353_p2 = scmp.lt.s32.totalorder %s2292_s26, 3  ;;  %s2294_s29 = smov [#allocation11]  }
  0x15   : > { %s365_s30 = sshll.u32 %s2294_s29, 4  ;;  %s2295_s14 = smov [#allocation14]   ;;  %s366_s30 = int_to_ptr.vmem [resolvable:$true] %s365_s30 }
  0x16   : > { %p2416_p3 = pnand %p1609_p0, %p353_p2  ;;  %s389_s15 = sshll.u32 %s2295_s14, 4  ;;  %s390_s15 = int_to_ptr.vmem [resolvable:$true] %s389_s15 }
  0x17   : > { %s2296_s16 = smov [#allocation17]   ;;  %s1967_s19 = scalar_lea.vmem %s366_s30, 256 }
  0x18   : > { %s2811_s28 = scalar_select %p2416_p3, 1, 0 }
  0x19   : > { %p1814_p4 = pneg %p2416_p3  ;;  %s413_s17 = sshll.u32 %s2296_s16, 4  ;;  %s414_s17 = int_to_ptr.vmem [resolvable:$true] %s413_s17 }
  0x1a   : > { %p1968_p8 = scmp.ne.s32.totalorder %s366_s30, %s1967_s19  ;;  %p1975_p11 = scmp.lt.s32.totalorder %s366_s30, %s366_s30 }
  0x1b   : > { %p2425_p6 = pnand %p1814_p4, %p2787_p1  ;;  %p1976_p12 = scmp.lt.s32.totalorder %s1967_s19, %s1967_s19 }
  0x1d   : > { %s2812_s13 = scalar_select %p2425_p6, 1, 0 }
  0x1e   : > { %p2431_p7 = pneg %p2425_p6  ;;  %p1977_p13 = por %p1976_p12, %p1975_p11 }
  0x20   : > { %p1970_p9 = pnand %p1968_p8, %p2431_p7 }
  0x22   : > { %p1971_p10 = pneg %p1970_p9 }
  0x24   : > { %p1978_p0 = pnand %p1977_p13, %p1971_p10 }
  0x26   : > { %1981 = shalt.err (!%p1978_p0)
}
  0x27   : > { %s2297_s20 = smov 64   ;;  %s2298_s29 = smov 4  }
  0x28   : > { %s2814_s4 = sld [smem:[#allocation34_spill]]  ;;  %s1993_s12 = scalar_lea.vmem %s390_s15, 256 }
  0x29   : > { %p1994_p2 = scmp.ne.s32.totalorder %s390_s15, %s1993_s12  ;;  %p2001_p9 = scmp.lt.s32.totalorder %s390_s15, %s390_s15 }
  0x2a   : > { %p2002_p5 = scmp.lt.s32.totalorder %s1993_s12, %s1993_s12 }
  0x2b   : > { %p1996_p4 = pnand %p1994_p2, %p2431_p7 }
  0x2c   : > { %p2003_p1 = por %p2002_p5, %p2001_p9 }
  0x2d   : > { %p1997_p8 = pneg %p1996_p4 }
  0x2e   : > { %1817 = dma.hbm_to_vmem [thread:$0]  (!%p2425_p6), %s2814_s4, 256, %s366_s30, [#allocation12], %s2297_s20, %s2297_s20, %s2298_s29  }
  0x2f   : > { %p2004_p11 = pnand %p2003_p1, %p1997_p8 }
  0x31   : > { %2007 = shalt.err (!%p2004_p11)
}
  0x32   : > { %s2815_s6 = sld [smem:[#allocation35_spill]]  ;;  %s2019_s14 = scalar_lea.vmem %s414_s17, 256 }
  0x33   : > { %p2020_p10 = scmp.ne.s32.totalorder %s414_s17, %s2019_s14  ;;  %p2027_p0 = scmp.lt.s32.totalorder %s414_s17, %s414_s17 }
  0x34   : > { %p2028_p2 = scmp.lt.s32.totalorder %s2019_s14, %s2019_s14 }
  0x35   : > { %p2022_p12 = pnand %p2020_p10, %p2431_p7 }
  0x36   : > { %p2029_p4 = por %p2028_p2, %p2027_p0 }
  0x37   : > { %p2023_p13 = pneg %p2022_p12 }
  0x38   : > { %1823 = dma.hbm_to_vmem [thread:$0]  (!%p2425_p6), %s2815_s6, 256, %s390_s15, [#allocation15], %s2297_s20, %s2297_s20, %s2298_s29  }
  0x39   : > { %p2030_p3 = pnand %p2029_p4, %p2023_p13 }
  0x3b   : > { %2033 = shalt.err (!%p2030_p3)
}
  0x3c   : > { %s2816_s8 = sld [smem:[#allocation36_spill]]  ;;  %s1608_s11 = sadd.s32 4294967294, %s2292_s26  }
  0x3d   : > { %s46_s15 = sadd.s32 1, %s2288_s25  ;;  %s55_s16 = sadd.s32 1, %s2280_s23 }
  0x3e   : > { %p48_p1 = scmp.ge.s32.totalorder %s46_s15, 2  ;;  %p62_p3 = scmp.ne.s32.totalorder %s2280_s23, %s2276_s22 }
  0x3f   : > { %p63_p5 = scmp.eq.s32.totalorder %s2292_s26, 0  ;;  %p68_p8 = scmp.ne.s32.totalorder %s2276_s22, %s2272_s21 }
  0x40   : > { %s2855_s15 = smov (%p48_p1, %s46_s15), 0  ;;  %p2819_p11 = scmp.eq.s32.totalorder %s2411_s27, 0 }
  0x41   : > { %2817 = sst [smem:[#allocation30_spill]] %s2855_s15  ;;  %p2466_p9 = por %p63_p5, %p62_p3 }
  0x42   : > { %1829 = dma.hbm_to_vmem [thread:$0]  (!%p2425_p6), %s2816_s8, 256, %s414_s17, [#allocation18], %s2297_s20, %s2297_s20, %s2298_s29  }
  0x43   : > { %p2472_p10 = por %p2819_p11, %p68_p8  ;;  %s50_s20 = ssub.s32 %s2288_s25, %s2855_s15 }
  0x44   : > { %p340_p12 = scmp.eq.s32.totalorder %s2411_s27, 1  ;;  %p53_p13 = scmp.eq.s32.totalorder %s50_s20, 0 }
  0x45   : > { %s2820_s17 = scalar_select %p2472_p10, 1, 0 }
  0x46   : > { %p346_p0 = scmp.eq.s32.totalorder %s1608_s11, 1  ;;  %p2479_p2 = por %p340_p12, %p62_p3 }
  0x47   : > { %p1853_p4 = scmp.lt.s32.totalorder %s2292_s26, 2  ;;  %s2791_s30 = sand.u32 1, %s2280_s23  }
  0x48   : > { %s2821_s29 = scalar_select %p2479_p2, 1, 0 }
  0x49   : > { %s2485_s14 = scalar_select %p53_p13, %s2280_s23, %s55_s16  }
  0x4a   : > { %2822 = sst [smem:[#allocation31_spill]] %s2821_s29  ;;  %p2487_p1 = por %p346_p0, %p68_p8 }
  0x4b   : > { %2823 = sst [smem:[#allocation32_spill]] %s2485_s14  ;;  %s2494_s4 = sshll.u32 %s2791_s30, 2 }
  0x4c   : > { %s2824_s12 = scalar_select %p2487_p1, 1, 0 }
  0x4d   : > { %s2497_s6 = sshll.u32 %s2288_s25, 6  ;;  %p2501_p3 = pnand %p1853_p4, %p2466_p9 }
  0x4e   : > { %2825 = sst [smem:[#allocation33_spill]] %s2824_s12  ;;  %s463_s16 = sand.u32 1, %s2292_s26  }
  0x4f   : > { %s472_s15 = scalar_lea.hbm %s2774_s1, %s2497_s6  ;;  %s467_s14 = scalar_lea.vmem [#allocation8], %s2494_s4 }
  0x50   : > { %s474_s12 = sshll.u32 %s467_s14, 4  ;;  %s2299_s30 = smov [#allocation13]   ;;  %s475_s12 = int_to_ptr.vmem [resolvable:$true] %s474_s12 }
  0x51   : > { %s379_s21 = sshll.u32 %s2299_s30, 4  ;;  %s2511_s25 = scalar_lea.sflag [#allocation9], %s463_s16  ;;  %s380_s21 = int_to_ptr.vmem [resolvable:$true] %s379_s21 }
  0x52   : > { %p2798_p5 = pneg %p2501_p3  ;;  %s2047_s19 = scalar_lea.vmem %s475_s12, 64 }
  0x53   : > { %p2048_p8 = scmp.ne.s32.totalorder %s475_s12, %s2047_s19  ;;  %s2300_s26 = smov [#allocation8]  }
  0x54   : > { %s2052_s29 = sshll.u32 %s2300_s26, 4  ;;  %s2053_s29 = int_to_ptr.vmem [resolvable:$false] %s2052_s29 }
  0x55   : > { %p2050_p9 = pnand %p2048_p8, %p2798_p5  ;;  %s2054_s8 = scalar_lea.vmem %s2053_s29, 128 }
  0x56   : > { %p2055_p12 = scmp.lt.s32.totalorder %s475_s12, %s2053_s29  ;;  %p2056_p13 = scmp.lt.s32.totalorder %s2054_s8, %s2047_s19 }
  0x57   : > { %p2051_p11 = pneg %p2050_p9 }
  0x58   : > { %p2057_p0 = por %p2056_p13, %p2055_p12 }
  0x5a   : > { %p2058_p4 = pnand %p2057_p0, %p2051_p11 }
  0x5c   : > { %2061 = shalt.err (!%p2058_p4)
}
  0x5d   : > { %1839 = dma.hbm_to_vmem [thread:$0]  (!%p2501_p3), %s472_s15, 64, %s475_s12, %s2511_s25  }
  0x5e   : > { %s2073_s14 = scalar_lea.vmem %s380_s21, 16  ;;  %s2080_s30 = scalar_lea.vmem %s380_s21, 32 }
  0x5f   : > { %p2074_p1 = scmp.ne.s32.totalorder %s380_s21, %s2073_s14  ;;  %p2081_p5 = scmp.lt.s32.totalorder %s380_s21, %s380_s21 }
  0x60   : > { %p2082_p2 = scmp.lt.s32.totalorder %s2080_s30, %s2073_s14 }
  0x61   : > { %p2076_p8 = pnand %p2074_p1, %p2431_p7 }
  0x62   : > { %p2083_p10 = por %p2082_p2, %p2081_p5 }
  0x63   : > { %p2077_p9 = pneg %p2076_p8 }
  0x65   : > { %p2084_p6 = pnand %p2083_p10, %p2077_p9 }
  0x67   : > { %2087 = shalt.err (!%p2084_p6)
}
  0x68   : > { %p2827_p11 = scmp.ne.s32.totalorder %s2812_s13, 0  ;;  %s2301_s15 = smov [#allocation16]  }
  0x69   : > { %s403_s12 = sshll.u32 %s2301_s15, 4  ;;  %s2302_s16 = smov [#allocation19]   ;;  %s404_s12 = int_to_ptr.vmem [resolvable:$true] %s403_s12 }
  0x6a   : > { %1820 = dma.hbm_to_vmem [thread:$0]  (!%p2827_p11), %s2778_s5, 16, %s380_s21, [#allocation12]  }
  0x6b   : > { %s427_s20 = sshll.u32 %s2302_s16, 4  ;;  %s2099_s19 = scalar_lea.vmem %s404_s12, 16  ;;  %s428_s20 = int_to_ptr.vmem [resolvable:$true] %s427_s20 }
  0x6c   : > { %p2100_p1 = scmp.ne.s32.totalorder %s404_s12, %s2099_s19  ;;  %s2106_s8 = scalar_lea.vmem %s404_s12, 32 }
  0x6d   : > { %p2107_p10 = scmp.lt.s32.totalorder %s404_s12, %s404_s12  ;;  %p2108_p6 = scmp.lt.s32.totalorder %s2106_s8, %s2099_s19 }
  0x6e   : > { %p2102_p12 = pnand %p2100_p1, %p2431_p7 }
  0x6f   : > { %p2109_p2 = por %p2108_p6, %p2107_p10 }
  0x70   : > { %p2103_p13 = pneg %p2102_p12 }
  0x72   : > { %p2110_p5 = pnand %p2109_p2, %p2103_p13 }
  0x74   : > { %2113 = shalt.err (!%p2110_p5)
}
  0x75   : > { %1826 = dma.hbm_to_vmem [thread:$0]  (!%p2827_p11), %s2780_s7, 16, %s404_s12, [#allocation15]  }
  0x76   : > { %s2125_s30 = scalar_lea.vmem %s428_s20, 16  ;;  %s2132_s26 = scalar_lea.vmem %s428_s20, 32 }
  0x77   : > { %p2126_p0 = scmp.ne.s32.totalorder %s428_s20, %s2125_s30  ;;  %p2133_p9 = scmp.lt.s32.totalorder %s428_s20, %s428_s20 }
  0x78   : > { %p2134_p1 = scmp.lt.s32.totalorder %s2132_s26, %s2125_s30 }
  0x79   : > { %p2128_p4 = pnand %p2126_p0, %p2431_p7 }
  0x7a   : > { %p2135_p12 = por %p2134_p1, %p2133_p9 }
  0x7b   : > { %p2129_p8 = pneg %p2128_p4 }
  0x7d   : > { %p2136_p10 = pnand %p2135_p12, %p2129_p8 }
  0x7f   : > { %2139 = shalt.err (!%p2136_p10)
}
  0x80   : > { %1832 = dma.hbm_to_vmem [thread:$0]  (!%p2827_p11), %s2782_s9, 16, %s428_s20, [#allocation18]  }
  0x81   : > { %s454_s16 = scalar_lea.hbm %s2773_s0, %s2497_s6  ;;  %s448_s19 = scalar_lea.vmem [#allocation5], %s2494_s4 }
  0x82   : > { %s456_s8 = sshll.u32 %s448_s19, 4  ;;  %s490_s13 = scalar_lea.hbm %s2775_s2, %s2497_s6  ;;  %s457_s8 = int_to_ptr.vmem [resolvable:$true] %s456_s8 }
  0x83   : > { %s2828_s30 = sand.u32 1, %s2280_s23   ;;  %s2153_s29 = scalar_lea.vmem %s457_s8, 64 }
  0x84   : > { %s445_s26 = scalar_lea.sflag [#allocation6], %s2828_s30  ;;  %p2154_p7 = scmp.ne.s32.totalorder %s457_s8, %s2153_s29 }
  0x85   : > { %p2829_p13 = pneg %p2501_p3  ;;  %s2303_s20 = smov [#allocation5]  }
  0x86   : > { %s2158_s15 = sshll.u32 %s2303_s20, 4  ;;  %s2159_s15 = int_to_ptr.vmem [resolvable:$false] %s2158_s15 }
  0x87   : > { %p2156_p6 = pnand %p2154_p7, %p2829_p13  ;;  %s2160_s18 = scalar_lea.vmem %s2159_s15, 128 }
  0x88   : > { %p2161_p11 = scmp.lt.s32.totalorder %s457_s8, %s2159_s15  ;;  %p2162_p5 = scmp.lt.s32.totalorder %s2160_s18, %s2153_s29 }
  0x89   : > { %p2157_p2 = pneg %p2156_p6 }
  0x8a   : > { %p2163_p0 = por %p2162_p5, %p2161_p11 }
  0x8c   : > { %p2164_p4 = pnand %p2163_p0, %p2157_p2 }
  0x8e   : > { %2167 = shalt.err (!%p2164_p4)
}
  0x8f   : > { %1836 = dma.hbm_to_vmem [thread:$0]  (!%p2501_p3), %s454_s16, 64, %s457_s8, %s445_s26  }
  0x90   : > { %s485_s12 = scalar_lea.vmem [#allocation10], %s2494_s4  ;;  %p2830_p9 = pmov %p2829_p13 }
  0x91   : > { %s492_s19 = sshll.u32 %s485_s12, 4  ;;  %s2304_s21 = smov [#allocation10]   ;;  %s493_s19 = int_to_ptr.vmem [resolvable:$true] %s492_s19 }
  0x92   : > { %s2181_s14 = scalar_lea.vmem %s493_s19, 64  ;;  %s2186_s30 = sshll.u32 %s2304_s21, 4  ;;  %s2187_s30 = int_to_ptr.vmem [resolvable:$false] %s2186_s30 }
  0x93   : > { %p2182_p8 = scmp.ne.s32.totalorder %s493_s19, %s2181_s14  ;;  %s2188_s29 = scalar_lea.vmem %s2187_s30, 128 }
  0x94   : > { %p2189_p10 = scmp.lt.s32.totalorder %s493_s19, %s2187_s30  ;;  %p2190_p7 = scmp.lt.s32.totalorder %s2188_s29, %s2181_s14 }
  0x95   : > { %p2184_p1 = pnand %p2182_p8, %p2830_p9 }
  0x96   : > { %p2191_p13 = por %p2190_p7, %p2189_p10 }
  0x97   : > { %p2185_p12 = pneg %p2184_p1 }
  0x99   : > { %p2192_p6 = pnand %p2191_p13, %p2185_p12 }
  0x9b   : > { %2195 = shalt.err (!%p2192_p6)
}
  0x9c   : > { %1842 = dma.hbm_to_vmem [thread:$0]  (!%p2501_p3), %s490_s13, 64, %s493_s19, %s2511_s25  }
  0x9d   : > { %p2831_p2 = scmp.ne.s32.totalorder %s2811_s28, 0 }
  0x9e   : > { %s2573_s8 = sand.u32 (!%p2831_p2), 1, %s2276_s22   ;;  %p2832_p11 = scmp.ne.s32.totalorder (!%p2831_p2), %s2820_s17, 0 }
  0x9f   : > { %507 = sbr.rel (%p2831_p2) target bundleno = 1569 (0x621), region = 68  ;;  %s2576_s26 = sshll.u32 (!%p2831_p2), %s2573_s8, 2 }
  0xa0   : > { %s510_s11 = scalar_lea.sflag (!%p2831_p2), [#allocation6], %s2573_s8  ;;  %s513_s20 = scalar_lea.vmem (!%p2831_p2), [#allocation5], %s2576_s26 }
  0xa4   : > { %2247 = dma.done.wait (%p2832_p11), %s510_s11, 64  }
  0xa5   : > { %2249 = vsyncadd (%p2832_p11), %s510_s11, 4294967232  ;;  %s518_s6 = sand.u32 1, %s2411_s27   ;;  %s522_s28 = scalar_lea.vmem [#allocation8], %s2576_s26 }
  0xa6   : > { %s519_s25 = scalar_lea.sflag [#allocation9], %s518_s6 }
  0xa7   : > { %2251 = dma.done.wait (%p2832_p11), %s519_s25, 128  }
  0xa8   : > { %2253 = vsyncadd (%p2832_p11), %s519_s25, 4294967168  ;;  %s531_s13 = scalar_lea.vmem [#allocation10], %s2576_s26  ;;  %p2833_p3 = scmp.eq.s32.totalorder %s2411_s27, 0 }
  0xaa   : > { %2255 = dma.done.wait (%p2833_p3), [#allocation12], 272   ;;  %p2834_p5 = pmov %p2833_p3 }
  0xab   : > { %p2835_p0 = pmov %p2833_p3 }
  0xac   : > { %2257 = vsyncadd (%p2834_p5), [#allocation12], 4294967024 }
  0xad   : > { %2259 = dma.done.wait (%p2835_p0), [#allocation15], 272   ;;  %p2836_p4 = pmov %p2835_p0 }
  0xae   : > { %p2837_p8 = pmov %p2835_p0 }
  0xaf   : > { %2261 = vsyncadd (%p2836_p4), [#allocation15], 4294967024 }
  0xb0   : > { %2263 = dma.done.wait (%p2837_p8), [#allocation18], 272   ;;  %p2838_p9 = pmov %p2835_p0 }
  0xb1   : > { %v2305_v0 = vmov 0.0   ;;  %vm2306_vm0 = vmmov 0   ;;  %v1926_v1 = vld [vmem:[#allocation14 + $0x8] sm:$0xff]   ;;  %v1927_v2 = vld [vmem:[#allocation14] sm:$0xff]   ;;  %vm641_vm1 = vcmask 261120   ;;  %v1928_v4 = vld [vmem:[#allocation11 + $0x8] sm:$0xff]   ;;  %v878_v47 = vlaneseq }
  0xb2   : > { %2265 = vsyncadd (%p2838_p9), [#allocation18], 4294967024  ;;  %1702 = vmatprep.subr.bf16.mxu0 %v2305_v0  ;;  %1706 = vmatprep.mubr.msk.bf16.mxu0 %vm2306_vm0, %v2305_v0  ;;  %v617_v3 = vld [vmem:[%s522_s28] sm:$0xf]  ;;  %v1929_v5 = vld [vmem:[#allocation11] sm:$0xff]   ;;  %vm686_vm2 = vcmask 257024  }
  0xb3   : > { %1710 = vmatprep.subr.bf16.mxu1 %v2305_v0  ;;  %1714 = vmatprep.mubr.msk.bf16.mxu1 %vm2306_vm0, %v2305_v0  ;;  %v757_v6 = vld [vmem:[%s513_s20] sm:$0xf]  ;;  %v688_v9 = vld [vmem:[%s531_s13] sm:$0xf]  ;;  %v1634_v10 = vld [vmem:[#allocation16] ss:$0 sm:$0xff] }
  0xb4   : > { %1703 = vmatpush3.bf16.msra.mxu0 %v1926_v1  ;;  %v1930_v7 = vld [vmem:[#allocation17 + $0x8] sm:$0xff]   ;;  %v1931_v8 = vld [vmem:[#allocation17] sm:$0xff]   ;;  %vm830_vm3 = vcmask 64512   ;;  %s2307_s27 = smov 112   ;;  %s2308_s17 = smov 120   ;;  %vm900_vm4 = vcmask 1043456  }
  0xb5   : > { %1704 = vmatprep.subr.bf16.mxu0 %v2305_v0  ;;  %1711 = vmatpush3.bf16.msra.mxu1 %v1930_v7  ;;  %v1642_v17 = vld [vmem:[#allocation13] ss:$0 sm:$0xff]  ;;  %s2309_s15 = smov 104   ;;  %v1638_v29 = vld [vmem:[#allocation19] ss:$0 sm:$0xff]  ;;  %p609_p1 = scmp.lt.s32.totalorder %s2284_s24, 1 }
  0xb6   : > { %1712 = vmatprep.subr.bf16.mxu1 %v2305_v0  ;;  %v879_v49 = vshrl.u32 %v878_v47, 7  ;;  %v2310_v51 = vmov 0   ;;  %vm945_vm7 = vcmask 60416   ;;  %s2311_s21 = smov 8   ;;  %s2312_s26 = smov 16   ;;  %vm1075_vm8 = vcmask 126016  }
  0xb7   : > { %s610_s18 = scalar_select %p609_p1, %s2284_s24, 1  ;;  %vm1204_vm9 = vcmask 191616   ;;  %vm1333_vm10 = vcmask 257216  }
  0xb8   : > { %1705 = vmatpush3.bf16.msra.mxu0 %v1927_v2  ;;  %v880_v50 = vsub.s32 0, %v879_v49  ;;  %s2313_s11 = smov 24   ;;  %s2839_s20 = sld [smem:[#allocation31_spill]] }
  0xb9   : > { %1718 = vmatprep.subr.bf16.mxu0 %v2305_v0  ;;  %1713 = vmatpush3.bf16.msra.mxu1 %v1931_v8  ;;  %s611_s14 = scalar_lea.vmem %s2776_s3, %s610_s18  ;;  %s1633_s6 = sshll.u32 %s2573_s8, 3 }
  0xba   : > { %1726 = vmatprep.subr.bf16.mxu1 %v2305_v0  ;;  %v826_v48 = vld [vmem:[%s611_s14] sm:$0x1]  ;;  %s2840_s13 = sld [smem:[#allocation37_spill]]  ;;  %s2314_s30 = smov [#allocation20]  }
  0xbb   : > { %1707 = vmatmul.mubr.msk.bf16.vlgmr.msra.gmra.mxu0 %vm641_vm1, %v617_v3  ;;  %vm827_vm5 = vcmp.eq.s32.totalorder %v826_v48, 0  ;;  %s2841_s19 = sld [smem:[#allocation38_spill]]  ;;  %s2200_s29 = sshll.u32 %s2314_s30, 4  ;;  %s2201_s29 = int_to_ptr.vmem [resolvable:$false] %s2200_s29 }
  0xbc   : > { %1719 = vmatpush3.bf16.msra.mxu0 %v1928_v4  ;;  %1722 = vmatprep.mubr.msk.bf16.mxu0 %vm2306_vm0, %v2305_v0  ;;  %v877_v52 = vsel %vm827_vm5, 1, %v2310_v51  ;;  %s2202_s4 = scalar_lea.vmem %s2201_s29, 256 }
  0xbd   : > { %1720 = vmatprep.subr.bf16.mxu0 %v2305_v0  ;;  %1715 = vmatmul.mubr.msk.bf16.vlgmr.msra.gmra.mxu1 %vm641_vm1, %v688_v9  ;;  %v2663_v53 = vrot.slane %v877_v52, %v880_v50 }
  0xbe   : > { %1728 = vmatprep.mubr.msk.bf16.mxu1 %vm2306_vm0, %v2305_v0  ;;  %p2842_p10 = scmp.ne.s32.totalorder %s2839_s20, 0 }
  0xbf   : > { %vm882_vm6 = vcmp.eq.s32.totalorder %v2663_v53, 1  ;;  %v1938_v53 = vld [vmem:[%s2783_s10 + $0x8] sm:$0xff]  }
  0xc0   : > { %1721 = vmatpush3.bf16.msra.mxu0 %v1929_v5 }
  0xc1   : > { %1732 = vmatprep.subr.bf16.mxu0 %v2305_v0 }
  0xc3   : > { %1723 = vmatmul.mubr.msk.bf16.vlgmr.msra.gmra.mxu0 %vm641_vm1, %v757_v6 }
  0xc4   : > { %1734 = vmatprep.mubr.msk.bf16.mxu0 %vm2306_vm0, %v2305_v0 }
 0x17b   : > { %v679_v11 = vpop.f32.mrf.mxu0 }
 0x17c   : > { %v680_v12 = vadd.f32 %v1634_v10, %v679_v11 }
 0x17d   : > { %v1708_v13 = vpop.f32.mrf.mxu0  ;;  %v749_v30 = vpop.f32.mrf.mxu1 }
 0x17e   : > { %v685_v14 = vpack.c.bf16 %v680_v12, %v680_v12  ;;  %v750_v31 = vadd.f32 %v1638_v29, %v749_v30 }
 0x17f   : > { %v682_v15 = vpop.f32.mrf.mxu0  ;;  %v1716_v32 = vpop.f32.mrf.mxu1 }
 0x180   : > { %687 = vst.msk [vmem:[#allocation2] sm:$0xf] %vm686_vm2, %v685_v14  ;;  %v755_v33 = vpack.c.bf16 %v750_v31, %v750_v31 }
 0x181   : > { %v1709_v16 = vpop.f32.mrf.mxu0  ;;  %v752_v34 = vpop.f32.mrf.mxu1 }
 0x182   : > { %756 = vst.msk [vmem:[#allocation3] sm:$0xf] %vm686_vm2, %v755_v33 }
 0x183   : > { %v819_v18 = vpop.f32.mrf.mxu0  ;;  %v1717_v35 = vpop.f32.mrf.mxu1 }
 0x184   : > { %v820_v19 = vadd.f32 %v1642_v17, %v819_v18 }
 0x185   : > { %v1724_v20 = vpop.f32.mrf.mxu0 }
 0x186   : > { %v825_v26 = vpack.c.bf16 %v820_v19, %v820_v19 }
 0x187   : > { %v828_v21 = vld [vmem:[#allocation2] sm:$0xf]  ;;  %v822_v23 = vpop.f32.mrf.mxu0 }
 0x188   : > { %v1932_v22 = vld [vmem:[#allocation2] ss:$0 sps:$4 sm:$0xff]   ;;  %v835_v24 = vsel %vm830_vm3, %v828_v21, 0 }
 0x189   : > { %v1933_v25 = vld [vmem:[#allocation2] ss:$0 sps:$4 sm:$0xff]   ;;  %1727 = vmatpush3.bf16.xpose.msra.mxu1 %v835_v24  ;;  %1084 = vrot.lane.b32.xlu1 %v1932_v22, %s2307_s27  ;;  %v1725_v27 = vpop.f32.mrf.mxu0  ;;  %v829_v36 = vld [vmem:[#allocation3] sm:$0xf] }
 0x18a   : > { %955 = vrot.lane.b32.xlu0 %v1933_v25, %s2308_s17  ;;  %1738 = vmatprep.subr.bf16.mxu1 %v2305_v0  ;;  %v1934_v28 = vld [vmem:[#allocation2] ss:$0 sps:$4 sm:$0xff]   ;;  %v902_v37 = vsel %vm900_vm4, %v829_v36, 0  ;;  %v1935_v20 = vld [vmem:[#allocation3] ss:$0 sps:$4 sm:$0xff]  }
 0x18b   : > { %1733 = vmatpush3.bf16.msra.mxu0 %v902_v37  ;;  %v1936_v37 = vld [vmem:[#allocation3] ss:$0 sps:$4 sm:$0xff]  }
 0x18c   : > { %1744 = vmatprep.subr.bf16.mxu0 %v2305_v0 }
 0x18d   : > { %1079 = vrot.lane.b32.xlu1 %v825_v26, %s2307_s27 }
 0x18e   : > { %950 = vrot.lane.b32.xlu0 %v825_v26, %s2308_s17 }
 0x190   : > { %1729 = vmatmul.mubr.msk.bf16.vlgmr.msra.gmra.mxu1 %vm830_vm3, %v825_v26 }
 0x191   : > { %1208 = vrot.lane.b32.xlu1 %v825_v26, %s2309_s15  ;;  %1740 = vmatprep.mubr.msk.bf16.mxu1 %vm2306_vm0, %v2305_v0 }
 0x192   : > { %1213 = vrot.lane.b32.xlu0 %v1934_v28, %s2309_s15 }
 0x1fb   : > { %v1085_v40 = vpop.permute.xlu1 %1084 }
 0x1fc   : > { %v956_v38 = vpop.permute.xlu0 %955  ;;  %v1090_v42 = vsel %vm830_vm3, %v1085_v40, 0  ;;  %v1937_v40 = vld [vmem:[#allocation3] ss:$0 sps:$4 sm:$0xff]  }
 0x1fd   : > { %v961_v39 = vsel %vm830_vm3, %v956_v38, 0 }
 0x1fe   : > { %1739 = vmatpush3.bf16.xpose.msra.mxu1 %v961_v39 }
 0x1ff   : > { %1750 = vmatprep.subr.bf16.mxu1 %v2305_v0  ;;  %v1080_v44 = vpop.permute.xlu1 %1079 }
 0x200   : > { %v951_v41 = vpop.permute.xlu0 %950 }
 0x203   : > { %v1209_v46 = vpop.permute.xlu1 %1208 }
 0x204   : > { %v1214_v43 = vpop.permute.xlu0 %1213 }
 0x205   : > { %1741 = vmatmul.mubr.msk.bf16.vlgmr.msra.gmra.mxu1 %vm830_vm3, %v951_v41  ;;  %v1219_v45 = vsel %vm830_vm3, %v1214_v43, 0 }
 0x206   : > { %1751 = vmatpush3.bf16.xpose.msra.mxu1 %v1090_v42  ;;  %1752 = vmatprep.mubr.msk.bf16.mxu1 %vm2306_vm0, %v2305_v0 }
 0x207   : > { %1762 = vmatprep.subr.bf16.mxu1 %v2305_v0 }
 0x20d   : > { %1753 = vmatmul.mubr.msk.bf16.vlgmr.msra.gmra.mxu1 %vm830_vm3, %v1080_v44 }
 0x20e   : > { %1763 = vmatpush3.bf16.xpose.msra.mxu1 %v1219_v45  ;;  %1764 = vmatprep.mubr.msk.bf16.mxu1 %vm2306_vm0, %v2305_v0 }
 0x20f   : > { %1774 = vmatprep.subr.bf16.mxu1 %v2305_v0 }
 0x215   : > { %1765 = vmatmul.mubr.msk.bf16.vlgmr.msra.gmra.mxu1 %vm830_vm3, %v1209_v46 }
 0x216   : > { %1778 = vmatprep.mubr.msk.bf16.mxu1 %vm2306_vm0, %v2305_v0  ;;  %1775 = vmatpush3.bf16.msra.mxu1 %v1938_v53 }
 0x217   : > { %1776 = vmatprep.subr.bf16.mxu1 %v2305_v0 }
 0x250   : > { %v871_v54 = vpop.f32.mrf.mxu1 }
 0x251   : > { %v883_v55 = vsel %vm882_vm6, -3.4028235e+38, %v871_v54 }
 0x252   : > { %v1730_v56 = vpop.f32.mrf.mxu1  ;;  %v884_v57 = vsel %vm830_vm3, %v883_v55, -inf }
 0x253   : > { %885 = vmax.xlane.f32.xlu0 %v884_v57 }
 0x254   : > { %v874_v58 = vpop.f32.mrf.mxu1 }
 0x256   : > { %v1731_v59 = vpop.f32.mrf.mxu1 }
 0x2c5   : > { %v997_v60 = vpop.f32.mrf.mxu1 }
 0x2c6   : > { %v1003_v61 = vsel %vm882_vm6, -3.4028235e+38, %v997_v60 }
 0x2c7   : > { %v1742_v62 = vpop.f32.mrf.mxu1  ;;  %v1004_v63 = vsel %vm830_vm3, %v1003_v61, -inf }
 0x2c8   : > { %1005 = vmax.xlane.f32.xlu1 %v1004_v63 }
 0x2c9   : > { %v1000_v1 = vpop.f32.mrf.mxu1 }
 0x2cb   : > { %v1743_v2 = vpop.f32.mrf.mxu1 }
 0x2cd   : > { %v1126_v3 = vpop.f32.mrf.mxu1 }
 0x2ce   : > { %v1132_v4 = vsel %vm882_vm6, -3.4028235e+38, %v1126_v3 }
 0x2cf   : > { %v1754_v5 = vpop.f32.mrf.mxu1  ;;  %v1133_v6 = vsel %vm830_vm3, %v1132_v4, -inf }
 0x2d0   : > { %1134 = vmax.xlane.f32.xlu0 %v1133_v6 }
 0x2d1   : > { %v1129_v7 = vpop.f32.mrf.mxu1 }
 0x2d3   : > { %v1755_v8 = vpop.f32.mrf.mxu1 }
 0x2d5   : > { %v1255_v9 = vpop.f32.mrf.mxu1 }
 0x2d6   : > { %v1261_v10 = vsel %vm882_vm6, -3.4028235e+38, %v1255_v9 }
 0x2d7   : > { %v1766_v11 = vpop.f32.mrf.mxu1  ;;  %v1262_v12 = vsel %vm830_vm3, %v1261_v10, -inf }
 0x2d8   : > { %1263 = vmax.xlane.f32.xlu0 %v1262_v12 }
 0x2d9   : > { %v1258_v13 = vpop.f32.mrf.mxu1 }
 0x2da   : > { %v1939_v13 = vld [vmem:[%s2783_s10] sm:$0xff]  }
 0x2db   : > { %v1767_v14 = vpop.f32.mrf.mxu1  ;;  %1777 = vmatpush3.bf16.msra.mxu1 %v1939_v13 }
 0x2dc   : > { %v886_v15 = vpop.xlane.xlu0 %885 }
 0x2dd   : > { %v887_v16 = vsub.f32 %v883_v55, %v886_v15 }
 0x2df   : > { %v888_v17 = vmul.f32 1.442695, %v887_v16 }
 0x2e1   : > { %1940 = vpow2.f32 %v888_v17 }
 0x2ee   : > { %v1941_v18 = vpop.eup %1940 }
 0x2ef   : > { %v890_v19 = vsel %vm830_vm3, %v1941_v18, 0.0 }
 0x2f0   : > { %891 = vadd.xlane.f32.xlu1 %v890_v19 }
 0x301   : > { %1020 = vrot.lane.b32.xlu1 %v1935_v20, %s2308_s17  ;;  %s608_s17 = scalar_lea.vmem [#allocation20], %s1633_s6 }
 0x351   : > { %v1006_v21 = vpop.xlane.xlu1 %1005 }
 0x352   : > { %v1007_v22 = vsub.f32 %v1003_v61, %v1006_v21 }
 0x354   : > { %v1008_v23 = vmul.f32 1.442695, %v1007_v22 }
 0x356   : > { %1942 = vpow2.f32 %v1008_v23 }
 0x359   : > { %v1135_v24 = vpop.xlane.xlu0 %1134 }
 0x35a   : > { %v1136_v25 = vsub.f32 %v1132_v4, %v1135_v24 }
 0x35c   : > { %v1137_v26 = vmul.f32 1.442695, %v1136_v25 }
 0x35e   : > { %1944 = vpow2.f32 %v1137_v26  ;;  %v1663_v26 = vld [vmem:[%s2840_s13] ss:$0 sm:$0xff] }
 0x361   : > { %v1264_v27 = vpop.xlane.xlu0 %1263 }
 0x362   : > { %v1265_v28 = vsub.f32 %v1261_v10, %v1264_v27 }
 0x363   : > { %v1943_v29 = vpop.eup %1942 }
 0x364   : > { %v1266_v30 = vmul.f32 1.442695, %v1265_v28  ;;  %v1010_v31 = vsel %vm830_vm3, %v1943_v29, 0.0 }
 0x365   : > { %1011 = vadd.xlane.f32.xlu0 %v1010_v31 }
 0x366   : > { %1946 = vpow2.f32 %v1266_v30 }
 0x36b   : > { %v1945_v32 = vpop.eup %1944 }
 0x36c   : > { %v1139_v33 = vsel %vm830_vm3, %v1945_v32, 0.0 }
 0x36d   : > { %1140 = vadd.xlane.f32.xlu1 %v1139_v33 }
 0x373   : > { %v1947_v34 = vpop.eup %1946 }
 0x374   : > { %v1268_v35 = vsel %vm830_vm3, %v1947_v34, 0.0 }
 0x375   : > { %1269 = vadd.xlane.f32.xlu0 %v1268_v35 }
 0x379   : > { %v892_v36 = vpop.xlane.xlu1 %891 }
 0x37a   : > { %1948 = vrcp.f32 %v892_v36 }
 0x37d   : > { %v1021_v41 = vpop.permute.xlu1 %1020 }
 0x37e   : > { %1278 = vrot.lane.b32.xlu1 %v1936_v37, %s2309_s15  ;;  %v1026_v44 = vsel %vm900_vm4, %v1021_v41, 0  ;;  %s1418_s15 = sshll.u32 %s608_s17, 4  ;;  %s2726_s15 = int_to_ptr.vmem [resolvable:$true] %s1418_s15 }
 0x37f   : > { %p2203_p6 = scmp.lt.s32.totalorder %s2726_s15, %s2201_s29 }
 0x387   : > { %v1949_v38 = vpop.eup %1948 }
 0x388   : > { %v894_v39 = vmul.f32 %v1949_v38, %v1941_v18 }
 0x38a   : > { %v895_v42 = vsel %vm882_vm6, 0.0, %v894_v39 }
 0x38b   : > { %1149 = vrot.lane.b32.xlu0 %v1937_v40, %s2307_s27  ;;  %v896_v43 = vpack.c.bf16 %v895_v42, %v895_v42  ;;  %s1668_s27 = sshll.u32 %s2284_s24, 7  ;;  %s2196_s24 = scalar_lea.vmem %s2726_s15, 128 }
 0x38c   : > { %s2724_s14 = scalar_lea.hbm %s2841_s19, %s1668_s27  ;;  %p2197_p12 = scmp.ne.s32.totalorder %s2726_s15, %s2196_s24 }
 0x38d   : > { %1735 = vmatmul.mubr.msk.bf16.vlgmr.msra.gmra.mxu0 %vm830_vm3, %v896_v43  ;;  %p2204_p2 = scmp.lt.s32.totalorder %s2202_s4, %s2196_s24 }
 0x38e   : > { %1745 = vmatpush3.bf16.msra.mxu0 %v1026_v44  ;;  %1746 = vmatprep.mubr.msk.bf16.mxu0 %vm2306_vm0, %v2305_v0  ;;  %p2198_p7 = pnand %p2197_p12, %p2842_p10 }
 0x38f   : > { %1756 = vmatprep.subr.bf16.mxu0 %v2305_v0  ;;  %p2205_p11 = por %p2204_p2, %p2203_p6 }
 0x390   : > { %p2199_p13 = pneg %p2198_p7 }
 0x392   : > { %p2206_p3 = pnand %p2205_p11, %p2199_p13 }
 0x3ee   : > { %v1012_v45 = vpop.xlane.xlu0 %1011 }
 0x3ef   : > { %1950 = vrcp.f32 %v1012_v45 }
 0x3f6   : > { %v1141_v46 = vpop.xlane.xlu1 %1140 }
 0x3f7   : > { %1952 = vrcp.f32 %v1141_v46 }
 0x3fa   : > { %v1279_v57 = vpop.permute.xlu1 %1278 }
 0x3fb   : > { %v1284_v60 = vsel %vm900_vm4, %v1279_v57, 0 }
 0x3fc   : > { %v1951_v47 = vpop.eup %1950 }
 0x3fd   : > { %v1014_v48 = vmul.f32 %v1951_v47, %v1943_v29 }
 0x3fe   : > { %v1270_v49 = vpop.xlane.xlu0 %1269 }
 0x3ff   : > { %1954 = vrcp.f32 %v1270_v49  ;;  %v1015_v50 = vsel %vm882_vm6, 0.0, %v1014_v48 }
 0x400   : > { %v1016_v51 = vpack.c.bf16 %v1015_v50, %v1015_v50 }
 0x402   : > { %1747 = vmatmul.mubr.msk.bf16.vlgmr.msra.gmra.mxu0 %vm830_vm3, %v1016_v51  ;;  %v1150_v52 = vpop.permute.xlu0 %1149 }
 0x403   : > { %v1155_v54 = vsel %vm900_vm4, %v1150_v52, 0  ;;  %1758 = vmatprep.mubr.msk.bf16.mxu0 %vm2306_vm0, %v2305_v0 }
 0x404   : > { %v1953_v55 = vpop.eup %1952  ;;  %1757 = vmatpush3.bf16.msra.mxu0 %v1155_v54 }
 0x405   : > { %1768 = vmatprep.subr.bf16.mxu0 %v2305_v0  ;;  %v1143_v56 = vmul.f32 %v1953_v55, %v1945_v32 }
 0x407   : > { %v1144_v58 = vsel %vm882_vm6, 0.0, %v1143_v56 }
 0x408   : > { %v1145_v59 = vpack.c.bf16 %v1144_v58, %v1144_v58 }
 0x40a   : > { %1759 = vmatmul.mubr.msk.bf16.vlgmr.msra.gmra.mxu0 %vm830_vm3, %v1145_v59 }
 0x40b   : > { %1769 = vmatpush3.bf16.msra.mxu0 %v1284_v60  ;;  %1770 = vmatprep.mubr.msk.bf16.mxu0 %vm2306_vm0, %v2305_v0 }
 0x40c   : > { %v1955_v61 = vpop.eup %1954 }
 0x40d   : > { %v1272_v62 = vmul.f32 %v1955_v61, %v1947_v34 }
 0x40f   : > { %v1273_v63 = vsel %vm882_vm6, 0.0, %v1272_v62 }
 0x410   : > { %v1274_v1 = vpack.c.bf16 %v1273_v63, %v1273_v63 }
 0x412   : > { %1771 = vmatmul.mubr.msk.bf16.vlgmr.msra.gmra.mxu0 %vm830_vm3, %v1274_v1 }
 0x44d   : > { %v938_v2 = vpop.f32.mrf.mxu0 }
 0x44e   : > { %v944_v3 = vpack.c.bf16 %v938_v2, %v938_v2 }
 0x44f   : > { %v1736_v4 = vpop.f32.mrf.mxu0 }
 0x450   : > { %946 = vst.msk [vmem:[#allocation4] sm:$0xf] %vm945_vm7, %v944_v3 }
 0x451   : > { %v941_v5 = vpop.f32.mrf.mxu0 }
 0x453   : > { %v1737_v6 = vpop.f32.mrf.mxu0 }
 0x4c2   : > { %v1062_v7 = vpop.f32.mrf.mxu0 }
 0x4c3   : > { %v1671_v8 = vpack.c.bf16 %v1062_v7, %v1062_v7 }
 0x4c4   : > { %v1748_v9 = vpop.f32.mrf.mxu0 }
 0x4c5   : > { %1072 = vrot.lane.b32.xlu1 %v1671_v8, %s2311_s21  ;;  %s1404_s21 = scalar_lea.sflag [#allocation7], %s2573_s8 }
 0x4c6   : > { %v1065_v10 = vpop.f32.mrf.mxu0 }
 0x4c8   : > { %v1749_v11 = vpop.f32.mrf.mxu0 }
 0x4ca   : > { %v1191_v12 = vpop.f32.mrf.mxu0 }
 0x4cb   : > { %v1672_v14 = vpack.c.bf16 %v1191_v12, %v1191_v12 }
 0x4cc   : > { %v1760_v15 = vpop.f32.mrf.mxu0 }
 0x4cd   : > { %1201 = vrot.lane.b32.xlu0 %v1672_v14, %s2312_s26 }
 0x4ce   : > { %v1194_v16 = vpop.f32.mrf.mxu0 }
 0x4d0   : > { %v1761_v17 = vpop.f32.mrf.mxu0 }
 0x4d2   : > { %v1320_v18 = vpop.f32.mrf.mxu0 }
 0x4d3   : > { %v1673_v19 = vpack.c.bf16 %v1320_v18, %v1320_v18 }
 0x4d4   : > { %v1772_v20 = vpop.f32.mrf.mxu0 }
 0x4d5   : > { %1330 = vrot.lane.b32.xlu1 %v1673_v19, %s2313_s11 }
 0x4d6   : > { %v1323_v21 = vpop.f32.mrf.mxu0 }
 0x4d8   : > { %v1773_v22 = vpop.f32.mrf.mxu0 }
 0x537   : > { %v1073_v23 = vpop.permute.xlu1 %1072 }
 0x538   : > { %1076 = vst.msk [vmem:[#allocation4] sm:$0xf] %vm1075_vm8, %v1073_v23 }
 0x53f   : > { %v1202_v0 = vpop.permute.xlu0 %1201 }
 0x540   : > { %1205 = vst.msk [vmem:[#allocation4] sm:$0xf] %vm1204_vm9, %v1202_v0 }
 0x547   : > { %v1331_v24 = vpop.permute.xlu1 %1330 }
 0x548   : > { %1334 = vst.msk [vmem:[#allocation4] sm:$0xf] %vm1333_vm10, %v1331_v24 }
 0x54f   : > { %v1335_v25 = vld [vmem:[#allocation4] sm:$0xf] }
 0x550   : > { %1779 = vmatmul.mubr.msk.bf16.vlgmr.msra.gmra.mxu1 %vm641_vm1, %v1335_v25 }
 0x610   : > { %v1396_v27 = vpop.f32.mrf.mxu1 }
 0x611   : > { %v1397_v28 = vadd.f32 %v1663_v26, %v1396_v27 }
 0x612   : > { %v1780_v29 = vpop.f32.mrf.mxu1 }
 0x613   : > { %1402 = vst.msk [vmem:[%s608_s17] sm:$0xff] %vm641_vm1, %v1397_v28 }
 0x614   : > { %v1399_v30 = vpop.f32.mrf.mxu1 }
 0x615   : > { %2209 = shalt.err (!%p2206_p3)
}
 0x616   : > { %s2210_s16 = scalar_lea.hbm %s2724_s14, 128  ;;  %s2214_s11 = scalar_lea.hbm %s2841_s19, 256 }
 0x617   : > { %p2211_p5 = scmp.ne.s32.totalorder %s2724_s14, %s2210_s16  ;;  %p2215_p8 = scmp.lt.s32.totalorder %s2724_s14, %s2841_s19 }
 0x618   : > { %p2216_p9 = scmp.lt.s32.totalorder %s2214_s11, %s2210_s16 }
 0x619   : > { %p2212_p0 = pnand %p2211_p5, %p2842_p10 }
 0x61a   : > { %p2217_p1 = por %p2216_p9, %p2215_p8 }
 0x61b   : > { %p2213_p4 = pneg %p2212_p0 }
 0x61d   : > { %p2218_p12 = pnand %p2217_p1, %p2213_p4 }
 0x61f   : > { %2221 = shalt.err (!%p2218_p12)
}
 0x620   : > { %1812 = dma.vmem_to_hbm [thread:$0]  (%p2842_p10), %s2726_s15, 128, %s2724_s14, %s1404_s21   ;;  %v1781_v31 = vpop.f32.mrf.mxu1 }
 0x621 PF: > { %s2843_s28 = sld [smem:[#allocation27_spill]] }
 0x622   : > { %s2844_s13 = sld [smem:[#allocation33_spill]] }
 0x623   : > { %s2845_s27 = sld [smem:[#allocation29_spill]] }
 0x627   : > { %s1430_s17 = sand.u32 1, %s2843_s28  }
 0x628   : > { %p2846_p7 = scmp.ne.s32.totalorder %s2844_s13, 0  ;;  %s1431_s18 = scalar_lea.sflag [#allocation7], %s1430_s17 }
 0x629   : > { %p2847_p13 = scmp.ge.s32.totalorder %s2845_s27, 2 }
 0x62b   : > { %p1844_p6 = pnand %p2847_p13, %p2846_p7 }
 0x62d   : > { %p1845_p2 = pneg %p1844_p6 }
 0x62f   : > { %2267 = dma.done.wait (%p1845_p2), %s1431_s18, 128  }
 0x630   : > { %2269 = vsyncadd (%p1845_p2), %s1431_s18, 4294967168  ;;  %s34_s26 = sadd.s32 1, %s2845_s27   ;;  %s2848_s20 = sld [smem:[#allocation32_spill]] }
 0x631   : > { %p31_p11 = scmp.ge.s32.totalorder %s34_s26, 4   ;;  %s2849_s24 = sld [smem:[#allocation28_spill]] }
 0x632   : > { %s2850_s25 = sld [smem:[#allocation30_spill]]  ;;  %s2851_s21 = smov %s2276_s22 }
 0x633   : > { %s2852_s22 = smov %s2280_s23  ;;  %33 = sbr.rel (!%p31_p11) target bundleno = 17 (0x11), region = 168 }
 0x636   : > { %s2853_s23 = smov %s2848_s20 }
 0x638   :  { %1436 = vsyncpa [#allocation6], 1 }
 0x639   :  { %1438 = vsyncpa [#allocation6 + $0x1], 1 }
 0x63a   :  { %1439 = vsyncpa [#allocation9], 1 }
 0x63b   :  { %1441 = vsyncpa [#allocation9 + $0x1], 1 }
 0x63c   :  { %1442 = vsyncpa [#allocation12], 1 }
 0x63d   :  { %1443 = vsyncpa [#allocation15], 1 }
 0x63e   :  { %1444 = vsyncpa [#allocation18], 1 }
 0x63f   :  { %1445 = vsyncpa [#allocation7], 1 }
 0x640   :  { %1447 = vsyncpa [#allocation7 + $0x1], 1 }

// kernel: tpu_custom_call.1
= control target key start
LH: loop header
LB: loop body
LE: loop exit
PB: predicated region body
PF: predicated region fallthrough
CT: control target
= control target key end

     0   :  { %s2773_s0 = inlined_call_operand.hbm [shape: bf16[2,8,32], index: 0, kind: input, shape index: {}]   ;;  %s2774_s1 = inlined_call_operand.hbm [shape: bf16[2,8,32], index: 1, kind: input, shape index: {}]   ;;  %s2775_s2 = inlined_call_operand.hbm [shape: bf16[2,8,32], index: 2, kind: input, shape index: {}]   ;;  %s2776_s3 = inlined_call_operand.vmem [shape: s32[2,1,8], index: 3, kind: input, shape index: {}]   ;;  %s2777_s4 = inlined_call_operand.hbm [shape: bf16[32,32], index: 4, kind: input, shape index: {}]   ;;  %s2778_s5 = inlined_call_operand.hbm [shape: f32[1,32], index: 5, kind: input, shape index: {}]   ;;  %s2779_s6 = inlined_call_operand.hbm [shape: bf16[32,32], index: 6, kind: input, shape index: {}]   ;;  %s2780_s7 = inlined_call_operand.hbm [shape: f32[1,32], index: 7, kind: input, shape index: {}]   ;;  %s2781_s8 = inlined_call_operand.hbm [shape: bf16[32,32], index: 8, kind: input, shape index: {}]   ;;  %s2782_s9 = inlined_call_operand.hbm [shape: f32[1,32], index: 9, kind: input, shape index: {}]   ;;  %s2783_s10 = inlined_call_operand.vmem [shape: bf16[32,32], index: 10, kind: input, shape index: {}]   ;;  %s2784_s11 = inlined_call_operand.vmem [shape: f32[1,32], index: 11, kind: input, shape index: {}]   ;;  %s2785_s12 = inlined_call_operand.hbm [shape: f32[2,8,32], index: 12, kind: output, shape index: {}]  }
   0x1   :  { %2803 = sst [smem:[#allocation34_spill]] %s2777_s4 }
   0x2   :  { %2804 = sst [smem:[#allocation35_spill]] %s2779_s6 }
   0x3   :  { %2805 = sst [smem:[#allocation36_spill]] %s2781_s8 }
   0x4   :  { %2806 = sst [smem:[#allocation37_spill]] %s2784_s11 }
   0x5   :  { %2807 = sst [smem:[#allocation38_spill]] %s2785_s12 }
   0x6   :  { %17 = vsyncpa [#allocation6], 0 }
   0x7   :  { %19 = vsyncpa [#allocation6 + $0x1], 0 }
   0x8   :  { %20 = vsyncpa [#allocation9], 0 }
   0x9   :  { %22 = vsyncpa [#allocation9 + $0x1], 0 }
   0xa   :  { %23 = vsyncpa [#allocation12], 0 }
   0xb   :  { %24 = vsyncpa [#allocation15], 0 }
   0xc   :  { %25 = vsyncpa [#allocation18], 0 }
   0xd   :  { %26 = vsyncpa [#allocation7], 0 }
   0xe   :  { %28 = vsyncpa [#allocation7 + $0x1], 0  ;;  %s2380_s21 = smov 0   ;;  %s2382_s22 = smov 0  }
   0xf   :  { %s2384_s23 = smov 0   ;;  %s2386_s24 = smov 0  }
  0x10   :  { %s2388_s25 = smov 0   ;;  %s2390_s26 = smov 0  }
  0x11 LB: > { %2808 = sst [smem:[#allocation27_spill]] %s2272_s21  ;;  %s2411_s27 = sadd.s32 4294967295, %s2292_s26   ;;  %s2292_s26 = sphi %s2390_s26, %s34_s26   ;;  %s2288_s25 = sphi %s2388_s25, %s2850_s25   ;;  %s2284_s24 = sphi %s2386_s24, %s2849_s24   ;;  %s2280_s23 = sphi %s2384_s23, %s2853_s23   ;;  %s2276_s22 = sphi %s2382_s22, %s2852_s22   ;;  %s2272_s21 = sphi %s2380_s21, %s2851_s21  }
  0x12   : > { %2809 = sst [smem:[#allocation28_spill]] %s2288_s25  ;;  %p1609_p0 = scmp.ge.s32.totalorder %s2292_s26, 1 }
  0x13   : > { %2810 = sst [smem:[#allocation29_spill]] %s2292_s26  ;;  %p2787_p1 = scmp.eq.s32.totalorder %s2411_s27, 0 }
  0x14   : > { %p353_p2 = scmp.lt.s32.totalorder %s2292_s26, 3  ;;  %s2294_s29 = smov [#allocation11]  }
  0x15   : > { %s365_s30 = sshll.u32 %s2294_s29, 4  ;;  %s2295_s14 = smov [#allocation14]   ;;  %s366_s30 = int_to_ptr.vmem [resolvable:$true] %s365_s30 }
  0x16   : > { %p2416_p3 = pnand %p1609_p0, %p353_p2  ;;  %s389_s15 = sshll.u32 %s2295_s14, 4  ;;  %s390_s15 = int_to_ptr.vmem [resolvable:$true] %s389_s15 }
  0x17   : > { %s2296_s16 = smov [#allocation17]   ;;  %s1967_s19 = scalar_lea.vmem %s366_s30, 256 }
  0x18   : > { %s2811_s28 = scalar_select %p2416_p3, 1, 0 }
  0x19   : > { %p1814_p4 = pneg %p2416_p3  ;;  %s413_s17 = sshll.u32 %s2296_s16, 4  ;;  %s414_s17 = int_to_ptr.vmem [resolvable:$true] %s413_s17 }
  0x1a   : > { %p1968_p8 = scmp.ne.s32.totalorder %s366_s30, %s1967_s19  ;;  %p1975_p11 = scmp.lt.s32.totalorder %s366_s30, %s366_s30 }
  0x1b   : > { %p2425_p6 = pnand %p1814_p4, %p2787_p1  ;;  %p1976_p12 = scmp.lt.s32.totalorder %s1967_s19, %s1967_s19 }
  0x1d   : > { %s2812_s13 = scalar_select %p2425_p6, 1, 0 }
  0x1e   : > { %p2431_p7 = pneg %p2425_p6  ;;  %p1977_p13 = por %p1976_p12, %p1975_p11 }
  0x20   : > { %p1970_p9 = pnand %p1968_p8, %p2431_p7 }
  0x22   : > { %p1971_p10 = pneg %p1970_p9 }
  0x24   : > { %p1978_p0 = pnand %p1977_p13, %p1971_p10 }
  0x26   : > { %1981 = shalt.err (!%p1978_p0)
}
  0x27   : > { %s2297_s20 = smov 64   ;;  %s2298_s29 = smov 4  }
  0x28   : > { %s2814_s4 = sld [smem:[#allocation34_spill]]  ;;  %s1993_s12 = scalar_lea.vmem %s390_s15, 256 }
  0x29   : > { %p1994_p2 = scmp.ne.s32.totalorder %s390_s15, %s1993_s12  ;;  %p2001_p9 = scmp.lt.s32.totalorder %s390_s15, %s390_s15 }
  0x2a   : > { %p2002_p5 = scmp.lt.s32.totalorder %s1993_s12, %s1993_s12 }
  0x2b   : > { %p1996_p4 = pnand %p1994_p2, %p2431_p7 }
  0x2c   : > { %p2003_p1 = por %p2002_p5, %p2001_p9 }
  0x2d   : > { %p1997_p8 = pneg %p1996_p4 }
  0x2e   : > { %1817 = dma.hbm_to_vmem [thread:$0]  (!%p2425_p6), %s2814_s4, 256, %s366_s30, [#allocation12], %s2297_s20, %s2297_s20, %s2298_s29  }
  0x2f   : > { %p2004_p11 = pnand %p2003_p1, %p1997_p8 }
  0x31   : > { %2007 = shalt.err (!%p2004_p11)
}
  0x32   : > { %s2815_s6 = sld [smem:[#allocation35_spill]]  ;;  %s2019_s14 = scalar_lea.vmem %s414_s17, 256 }
  0x33   : > { %p2020_p10 = scmp.ne.s32.totalorder %s414_s17, %s2019_s14  ;;  %p2027_p0 = scmp.lt.s32.totalorder %s414_s17, %s414_s17 }
  0x34   : > { %p2028_p2 = scmp.lt.s32.totalorder %s2019_s14, %s2019_s14 }
  0x35   : > { %p2022_p12 = pnand %p2020_p10, %p2431_p7 }
  0x36   : > { %p2029_p4 = por %p2028_p2, %p2027_p0 }
  0x37   : > { %p2023_p13 = pneg %p2022_p12 }
  0x38   : > { %1823 = dma.hbm_to_vmem [thread:$0]  (!%p2425_p6), %s2815_s6, 256, %s390_s15, [#allocation15], %s2297_s20, %s2297_s20, %s2298_s29  }
  0x39   : > { %p2030_p3 = pnand %p2029_p4, %p2023_p13 }
  0x3b   : > { %2033 = shalt.err (!%p2030_p3)
}
  0x3c   : > { %s2816_s8 = sld [smem:[#allocation36_spill]]  ;;  %s1608_s11 = sadd.s32 4294967294, %s2292_s26  }
  0x3d   : > { %s46_s15 = sadd.s32 1, %s2288_s25  ;;  %s55_s16 = sadd.s32 1, %s2280_s23 }
  0x3e   : > { %p48_p1 = scmp.ge.s32.totalorder %s46_s15, 2  ;;  %p62_p3 = scmp.ne.s32.totalorder %s2280_s23, %s2276_s22 }
  0x3f   : > { %p63_p5 = scmp.eq.s32.totalorder %s2292_s26, 0  ;;  %p68_p8 = scmp.ne.s32.totalorder %s2276_s22, %s2272_s21 }
  0x40   : > { %s2855_s15 = smov (%p48_p1, %s46_s15), 0  ;;  %p2819_p11 = scmp.eq.s32.totalorder %s2411_s27, 0 }
  0x41   : > { %2817 = sst [smem:[#allocation30_spill]] %s2855_s15  ;;  %p2466_p9 = por %p63_p5, %p62_p3 }
  0x42   : > { %1829 = dma.hbm_to_vmem [thread:$0]  (!%p2425_p6), %s2816_s8, 256, %s414_s17, [#allocation18], %s2297_s20, %s2297_s20, %s2298_s29  }
  0x43   : > { %p2472_p10 = por %p2819_p11, %p68_p8  ;;  %s50_s20 = ssub.s32 %s2288_s25, %s2855_s15 }
  0x44   : > { %p340_p12 = scmp.eq.s32.totalorder %s2411_s27, 1  ;;  %p53_p13 = scmp.eq.s32.totalorder %s50_s20, 0 }
  0x45   : > { %s2820_s17 = scalar_select %p2472_p10, 1, 0 }
  0x46   : > { %p346_p0 = scmp.eq.s32.totalorder %s1608_s11, 1  ;;  %p2479_p2 = por %p340_p12, %p62_p3 }
  0x47   : > { %p1853_p4 = scmp.lt.s32.totalorder %s2292_s26, 2  ;;  %s2791_s30 = sand.u32 1, %s2280_s23  }
  0x48   : > { %s2821_s29 = scalar_select %p2479_p2, 1, 0 }
  0x49   : > { %s2485_s14 = scalar_select %p53_p13, %s2280_s23, %s55_s16  }
  0x4a   : > { %2822 = sst [smem:[#allocation31_spill]] %s2821_s29  ;;  %p2487_p1 = por %p346_p0, %p68_p8 }
  0x4b   : > { %2823 = sst [smem:[#allocation32_spill]] %s2485_s14  ;;  %s2494_s4 = sshll.u32 %s2791_s30, 2 }
  0x4c   : > { %s2824_s12 = scalar_select %p2487_p1, 1, 0 }
  0x4d   : > { %s2497_s6 = sshll.u32 %s2288_s25, 6  ;;  %p2501_p3 = pnand %p1853_p4, %p2466_p9 }
  0x4e   : > { %2825 = sst [smem:[#allocation33_spill]] %s2824_s12  ;;  %s463_s16 = sand.u32 1, %s2292_s26  }
  0x4f   : > { %s472_s15 = scalar_lea.hbm %s2774_s1, %s2497_s6  ;;  %s467_s14 = scalar_lea.vmem [#allocation8], %s2494_s4 }
  0x50   : > { %s474_s12 = sshll.u32 %s467_s14, 4  ;;  %s2299_s30 = smov [#allocation13]   ;;  %s475_s12 = int_to_ptr.vmem [resolvable:$true] %s474_s12 }
  0x51   : > { %s379_s21 = sshll.u32 %s2299_s30, 4  ;;  %s2511_s25 = scalar_lea.sflag [#allocation9], %s463_s16  ;;  %s380_s21 = int_to_ptr.vmem [resolvable:$true] %s379_s21 }
  0x52   : > { %p2798_p5 = pneg %p2501_p3  ;;  %s2047_s19 = scalar_lea.vmem %s475_s12, 64 }
  0x53   : > { %p2048_p8 = scmp.ne.s32.totalorder %s475_s12, %s2047_s19  ;;  %s2300_s26 = smov [#allocation8]  }
  0x54   : > { %s2052_s29 = sshll.u32 %s2300_s26, 4  ;;  %s2053_s29 = int_to_ptr.vmem [resolvable:$false] %s2052_s29 }
  0x55   : > { %p2050_p9 = pnand %p2048_p8, %p2798_p5  ;;  %s2054_s8 = scalar_lea.vmem %s2053_s29, 128 }
  0x56   : > { %p2055_p12 = scmp.lt.s32.totalorder %s475_s12, %s2053_s29  ;;  %p2056_p13 = scmp.lt.s32.totalorder %s2054_s8, %s2047_s19 }
  0x57   : > { %p2051_p11 = pneg %p2050_p9 }
  0x58   : > { %p2057_p0 = por %p2056_p13, %p2055_p12 }
  0x5a   : > { %p2058_p4 = pnand %p2057_p0, %p2051_p11 }
  0x5c   : > { %2061 = shalt.err (!%p2058_p4)
}
  0x5d   : > { %1839 = dma.hbm_to_vmem [thread:$0]  (!%p2501_p3), %s472_s15, 64, %s475_s12, %s2511_s25  }
  0x5e   : > { %s2073_s14 = scalar_lea.vmem %s380_s21, 16  ;;  %s2080_s30 = scalar_lea.vmem %s380_s21, 32 }
  0x5f   : > { %p2074_p1 = scmp.ne.s32.totalorder %s380_s21, %s2073_s14  ;;  %p2081_p5 = scmp.lt.s32.totalorder %s380_s21, %s380_s21 }
  0x60   : > { %p2082_p2 = scmp.lt.s32.totalorder %s2080_s30, %s2073_s14 }
  0x61   : > { %p2076_p8 = pnand %p2074_p1, %p2431_p7 }
  0x62   : > { %p2083_p10 = por %p2082_p2, %p2081_p5 }
  0x63   : > { %p2077_p9 = pneg %p2076_p8 }
  0x65   : > { %p2084_p6 = pnand %p2083_p10, %p2077_p9 }
  0x67   : > { %2087 = shalt.err (!%p2084_p6)
}
  0x68   : > { %p2827_p11 = scmp.ne.s32.totalorder %s2812_s13, 0  ;;  %s2301_s15 = smov [#allocation16]  }
  0x69   : > { %s403_s12 = sshll.u32 %s2301_s15, 4  ;;  %s2302_s16 = smov [#allocation19]   ;;  %s404_s12 = int_to_ptr.vmem [resolvable:$true] %s403_s12 }
  0x6a   : > { %1820 = dma.hbm_to_vmem [thread:$0]  (!%p2827_p11), %s2778_s5, 16, %s380_s21, [#allocation12]  }
  0x6b   : > { %s427_s20 = sshll.u32 %s2302_s16, 4  ;;  %s2099_s19 = scalar_lea.vmem %s404_s12, 16  ;;  %s428_s20 = int_to_ptr.vmem [resolvable:$true] %s427_s20 }
  0x6c   : > { %p2100_p1 = scmp.ne.s32.totalorder %s404_s12, %s2099_s19  ;;  %s2106_s8 = scalar_lea.vmem %s404_s12, 32 }
  0x6d   : > { %p2107_p10 = scmp.lt.s32.totalorder %s404_s12, %s404_s12  ;;  %p2108_p6 = scmp.lt.s32.totalorder %s2106_s8, %s2099_s19 }
  0x6e   : > { %p2102_p12 = pnand %p2100_p1, %p2431_p7 }
  0x6f   : > { %p2109_p2 = por %p2108_p6, %p2107_p10 }
  0x70   : > { %p2103_p13 = pneg %p2102_p12 }
  0x72   : > { %p2110_p5 = pnand %p2109_p2, %p2103_p13 }
  0x74   : > { %2113 = shalt.err (!%p2110_p5)
}
  0x75   : > { %1826 = dma.hbm_to_vmem [thread:$0]  (!%p2827_p11), %s2780_s7, 16, %s404_s12, [#allocation15]  }
  0x76   : > { %s2125_s30 = scalar_lea.vmem %s428_s20, 16  ;;  %s2132_s26 = scalar_lea.vmem %s428_s20, 32 }
  0x77   : > { %p2126_p0 = scmp.ne.s32.totalorder %s428_s20, %s2125_s30  ;;  %p2133_p9 = scmp.lt.s32.totalorder %s428_s20, %s428_s20 }
  0x78   : > { %p2134_p1 = scmp.lt.s32.totalorder %s2132_s26, %s2125_s30 }
  0x79   : > { %p2128_p4 = pnand %p2126_p0, %p2431_p7 }
  0x7a   : > { %p2135_p12 = por %p2134_p1, %p2133_p9 }
  0x7b   : > { %p2129_p8 = pneg %p2128_p4 }
  0x7d   : > { %p2136_p10 = pnand %p2135_p12, %p2129_p8 }
  0x7f   : > { %2139 = shalt.err (!%p2136_p10)
}
  0x80   : > { %1832 = dma.hbm_to_vmem [thread:$0]  (!%p2827_p11), %s2782_s9, 16, %s428_s20, [#allocation18]  }
  0x81   : > { %s454_s16 = scalar_lea.hbm %s2773_s0, %s2497_s6  ;;  %s448_s19 = scalar_lea.vmem [#allocation5], %s2494_s4 }
  0x82   : > { %s456_s8 = sshll.u32 %s448_s19, 4  ;;  %s490_s13 = scalar_lea.hbm %s2775_s2, %s2497_s6  ;;  %s457_s8 = int_to_ptr.vmem [resolvable:$true] %s456_s8 }
  0x83   : > { %s2828_s30 = sand.u32 1, %s2280_s23   ;;  %s2153_s29 = scalar_lea.vmem %s457_s8, 64 }
  0x84   : > { %s445_s26 = scalar_lea.sflag [#allocation6], %s2828_s30  ;;  %p2154_p7 = scmp.ne.s32.totalorder %s457_s8, %s2153_s29 }
  0x85   : > { %p2829_p13 = pneg %p2501_p3  ;;  %s2303_s20 = smov [#allocation5]  }
  0x86   : > { %s2158_s15 = sshll.u32 %s2303_s20, 4  ;;  %s2159_s15 = int_to_ptr.vmem [resolvable:$false] %s2158_s15 }
  0x87   : > { %p2156_p6 = pnand %p2154_p7, %p2829_p13  ;;  %s2160_s18 = scalar_lea.vmem %s2159_s15, 128 }
  0x88   : > { %p2161_p11 = scmp.lt.s32.totalorder %s457_s8, %s2159_s15  ;;  %p2162_p5 = scmp.lt.s32.totalorder %s2160_s18, %s2153_s29 }
  0x89   : > { %p2157_p2 = pneg %p2156_p6 }
  0x8a   : > { %p2163_p0 = por %p2162_p5, %p2161_p11 }
  0x8c   : > { %p2164_p4 = pnand %p2163_p0, %p2157_p2 }
  0x8e   : > { %2167 = shalt.err (!%p2164_p4)
}
  0x8f   : > { %1836 = dma.hbm_to_vmem [thread:$0]  (!%p2501_p3), %s454_s16, 64, %s457_s8, %s445_s26  }
  0x90   : > { %s485_s12 = scalar_lea.vmem [#allocation10], %s2494_s4  ;;  %p2830_p9 = pmov %p2829_p13 }
  0x91   : > { %s492_s19 = sshll.u32 %s485_s12, 4  ;;  %s2304_s21 = smov [#allocation10]   ;;  %s493_s19 = int_to_ptr.vmem [resolvable:$true] %s492_s19 }
  0x92   : > { %s2181_s14 = scalar_lea.vmem %s493_s19, 64  ;;  %s2186_s30 = sshll.u32 %s2304_s21, 4  ;;  %s2187_s30 = int_to_ptr.vmem [resolvable:$false] %s2186_s30 }
  0x93   : > { %p2182_p8 = scmp.ne.s32.totalorder %s493_s19, %s2181_s14  ;;  %s2188_s29 = scalar_lea.vmem %s2187_s30, 128 }
  0x94   : > { %p2189_p10 = scmp.lt.s32.totalorder %s493_s19, %s2187_s30  ;;  %p2190_p7 = scmp.lt.s32.totalorder %s2188_s29, %s2181_s14 }
  0x95   : > { %p2184_p1 = pnand %p2182_p8, %p2830_p9 }
  0x96   : > { %p2191_p13 = por %p2190_p7, %p2189_p10 }
  0x97   : > { %p2185_p12 = pneg %p2184_p1 }
  0x99   : > { %p2192_p6 = pnand %p2191_p13, %p2185_p12 }
  0x9b   : > { %2195 = shalt.err (!%p2192_p6)
}
  0x9c   : > { %1842 = dma.hbm_to_vmem [thread:$0]  (!%p2501_p3), %s490_s13, 64, %s493_s19, %s2511_s25  }
  0x9d   : > { %p2831_p2 = scmp.ne.s32.totalorder %s2811_s28, 0 }
  0x9e   : > { %s2573_s8 = sand.u32 (!%p2831_p2), 1, %s2276_s22   ;;  %p2832_p11 = scmp.ne.s32.totalorder (!%p2831_p2), %s2820_s17, 0 }
  0x9f   : > { %507 = sbr.rel (%p2831_p2) target bundleno = 1569 (0x621), region = 68  ;;  %s2576_s26 = sshll.u32 (!%p2831_p2), %s2573_s8, 2 }
  0xa0   : > { %s510_s11 = scalar_lea.sflag (!%p2831_p2), [#allocation6], %s2573_s8  ;;  %s513_s20 = scalar_lea.vmem (!%p2831_p2), [#allocation5], %s2576_s26 }
  0xa4   : > { %2247 = dma.done.wait (%p2832_p11), %s510_s11, 64  }
  0xa5   : > { %2249 = vsyncadd (%p2832_p11), %s510_s11, 4294967232  ;;  %s518_s6 = sand.u32 1, %s2411_s27   ;;  %s522_s28 = scalar_lea.vmem [#allocation8], %s2576_s26 }
  0xa6   : > { %s519_s25 = scalar_lea.sflag [#allocation9], %s518_s6 }
  0xa7   : > { %2251 = dma.done.wait (%p2832_p11), %s519_s25, 128  }
  0xa8   : > { %2253 = vsyncadd (%p2832_p11), %s519_s25, 4294967168  ;;  %s531_s13 = scalar_lea.vmem [#allocation10], %s2576_s26  ;;  %p2833_p3 = scmp.eq.s32.totalorder %s2411_s27, 0 }
  0xaa   : > { %2255 = dma.done.wait (%p2833_p3), [#allocation12], 272   ;;  %p2834_p5 = pmov %p2833_p3 }
  0xab   : > { %p2835_p0 = pmov %p2833_p3 }
  0xac   : > { %2257 = vsyncadd (%p2834_p5), [#allocation12], 4294967024 }
  0xad   : > { %2259 = dma.done.wait (%p2835_p0), [#allocation15], 272   ;;  %p2836_p4 = pmov %p2835_p0 }
  0xae   : > { %p2837_p8 = pmov %p2835_p0 }
  0xaf   : > { %2261 = vsyncadd (%p2836_p4), [#allocation15], 4294967024 }
  0xb0   : > { %2263 = dma.done.wait (%p2837_p8), [#allocation18], 272   ;;  %p2838_p9 = pmov %p2835_p0 }
  0xb1   : > { %v2305_v0 = vmov 0.0   ;;  %vm2306_vm0 = vmmov 0   ;;  %v1926_v1 = vld [vmem:[#allocation14 + $0x8] sm:$0xff]   ;;  %v1927_v2 = vld [vmem:[#allocation14] sm:$0xff]   ;;  %vm641_vm1 = vcmask 261120   ;;  %v1928_v4 = vld [vmem:[#allocation11 + $0x8] sm:$0xff]   ;;  %v878_v47 = vlaneseq }
  0xb2   : > { %2265 = vsyncadd (%p2838_p9), [#allocation18], 4294967024  ;;  %1702 = vmatprep.subr.bf16.mxu0 %v2305_v0  ;;  %1706 = vmatprep.mubr.msk.bf16.mxu0 %vm2306_vm0, %v2305_v0  ;;  %v617_v3 = vld [vmem:[%s522_s28] sm:$0xf]  ;;  %v1929_v5 = vld [vmem:[#allocation11] sm:$0xff]   ;;  %vm686_vm2 = vcmask 257024  }
  0xb3   : > { %1710 = vmatprep.subr.bf16.mxu1 %v2305_v0  ;;  %1714 = vmatprep.mubr.msk.bf16.mxu1 %vm2306_vm0, %v2305_v0  ;;  %v757_v6 = vld [vmem:[%s513_s20] sm:$0xf]  ;;  %v688_v9 = vld [vmem:[%s531_s13] sm:$0xf]  ;;  %v1634_v10 = vld [vmem:[#allocation16] ss:$0 sm:$0xff] }
  0xb4   : > { %1703 = vmatpush3.bf16.msra.mxu0 %v1926_v1  ;;  %v1930_v7 = vld [vmem:[#allocation17 + $0x8] sm:$0xff]   ;;  %v1931_v8 = vld [vmem:[#allocation17] sm:$0xff]   ;;  %vm830_vm3 = vcmask 64512   ;;  %s2307_s27 = smov 112   ;;  %s2308_s17 = smov 120   ;;  %vm900_vm4 = vcmask 1043456  }
  0xb5   : > { %1704 = vmatprep.subr.bf16.mxu0 %v2305_v0  ;;  %1711 = vmatpush3.bf16.msra.mxu1 %v1930_v7  ;;  %v1642_v17 = vld [vmem:[#allocation13] ss:$0 sm:$0xff]  ;;  %s2309_s15 = smov 104   ;;  %v1638_v29 = vld [vmem:[#allocation19] ss:$0 sm:$0xff]  ;;  %p609_p1 = scmp.lt.s32.totalorder %s2284_s24, 1 }
  0xb6   : > { %1712 = vmatprep.subr.bf16.mxu1 %v2305_v0  ;;  %v879_v49 = vshrl.u32 %v878_v47, 7  ;;  %v2310_v51 = vmov 0   ;;  %vm945_vm7 = vcmask 60416   ;;  %s2311_s21 = smov 8   ;;  %s2312_s26 = smov 16   ;;  %vm1075_vm8 = vcmask 126016  }
  0xb7   : > { %s610_s18 = scalar_select %p609_p1, %s2284_s24, 1  ;;  %vm1204_vm9 = vcmask 191616   ;;  %vm1333_vm10 = vcmask 257216  }
  0xb8   : > { %1705 = vmatpush3.bf16.msra.mxu0 %v1927_v2  ;;  %v880_v50 = vsub.s32 0, %v879_v49  ;;  %s2313_s11 = smov 24   ;;  %s2839_s20 = sld [smem:[#allocation31_spill]] }
  0xb9   : > { %1718 = vmatprep.subr.bf16.mxu0 %v2305_v0  ;;  %1713 = vmatpush3.bf16.msra.mxu1 %v1931_v8  ;;  %s611_s14 = scalar_lea.vmem %s2776_s3, %s610_s18  ;;  %s1633_s6 = sshll.u32 %s2573_s8, 3 }
  0xba   : > { %1726 = vmatprep.subr.bf16.mxu1 %v2305_v0  ;;  %v826_v48 = vld [vmem:[%s611_s14] sm:$0x1]  ;;  %s2840_s13 = sld [smem:[#allocation37_spill]]  ;;  %s2314_s30 = smov [#allocation20]  }
  0xbb   : > { %1707 = vmatmul.mubr.msk.bf16.vlgmr.msra.gmra.mxu0 %vm641_vm1, %v617_v3  ;;  %vm827_vm5 = vcmp.eq.s32.totalorder %v826_v48, 0  ;;  %s2841_s19 = sld [smem:[#allocation38_spill]]  ;;  %s2200_s29 = sshll.u32 %s2314_s30, 4  ;;  %s2201_s29 = int_to_ptr.vmem [resolvable:$false] %s2200_s29 }
  0xbc   : > { %1719 = vmatpush3.bf16.msra.mxu0 %v1928_v4  ;;  %1722 = vmatprep.mubr.msk.bf16.mxu0 %vm2306_vm0, %v2305_v0  ;;  %v877_v52 = vsel %vm827_vm5, 1, %v2310_v51  ;;  %s2202_s4 = scalar_lea.vmem %s2201_s29, 256 }
  0xbd   : > { %1720 = vmatprep.subr.bf16.mxu0 %v2305_v0  ;;  %1715 = vmatmul.mubr.msk.bf16.vlgmr.msra.gmra.mxu1 %vm641_vm1, %v688_v9  ;;  %v2663_v53 = vrot.slane %v877_v52, %v880_v50 }
  0xbe   : > { %1728 = vmatprep.mubr.msk.bf16.mxu1 %vm2306_vm0, %v2305_v0  ;;  %p2842_p10 = scmp.ne.s32.totalorder %s2839_s20, 0 }
  0xbf   : > { %vm882_vm6 = vcmp.eq.s32.totalorder %v2663_v53, 1  ;;  %v1938_v53 = vld [vmem:[%s2783_s10 + $0x8] sm:$0xff]  }
  0xc0   : > { %1721 = vmatpush3.bf16.msra.mxu0 %v1929_v5 }
  0xc1   : > { %1732 = vmatprep.subr.bf16.mxu0 %v2305_v0 }
  0xc3   : > { %1723 = vmatmul.mubr.msk.bf16.vlgmr.msra.gmra.mxu0 %vm641_vm1, %v757_v6 }
  0xc4   : > { %1734 = vmatprep.mubr.msk.bf16.mxu0 %vm2306_vm0, %v2305_v0 }
 0x17b   : > { %v679_v11 = vpop.f32.mrf.mxu0 }
 0x17c   : > { %v680_v12 = vadd.f32 %v1634_v10, %v679_v11 }
 0x17d   : > { %v1708_v13 = vpop.f32.mrf.mxu0  ;;  %v749_v30 = vpop.f32.mrf.mxu1 }
 0x17e   : > { %v685_v14 = vpack.c.bf16 %v680_v12, %v680_v12  ;;  %v750_v31 = vadd.f32 %v1638_v29, %v749_v30 }
 0x17f   : > { %v682_v15 = vpop.f32.mrf.mxu0  ;;  %v1716_v32 = vpop.f32.mrf.mxu1 }
 0x180   : > { %687 = vst.msk [vmem:[#allocation2] sm:$0xf] %vm686_vm2, %v685_v14  ;;  %v755_v33 = vpack.c.bf16 %v750_v31, %v750_v31 }
 0x181   : > { %v1709_v16 = vpop.f32.mrf.mxu0  ;;  %v752_v34 = vpop.f32.mrf.mxu1 }
 0x182   : > { %756 = vst.msk [vmem:[#allocation3] sm:$0xf] %vm686_vm2, %v755_v33 }
 0x183   : > { %v819_v18 = vpop.f32.mrf.mxu0  ;;  %v1717_v35 = vpop.f32.mrf.mxu1 }
 0x184   : > { %v820_v19 = vadd.f32 %v1642_v17, %v819_v18 }
 0x185   : > { %v1724_v20 = vpop.f32.mrf.mxu0 }
 0x186   : > { %v825_v26 = vpack.c.bf16 %v820_v19, %v820_v19 }
 0x187   : > { %v828_v21 = vld [vmem:[#allocation2] sm:$0xf]  ;;  %v822_v23 = vpop.f32.mrf.mxu0 }
 0x188   : > { %v1932_v22 = vld [vmem:[#allocation2] ss:$0 sps:$4 sm:$0xff]   ;;  %v835_v24 = vsel %vm830_vm3, %v828_v21, 0 }
 0x189   : > { %v1933_v25 = vld [vmem:[#allocation2] ss:$0 sps:$4 sm:$0xff]   ;;  %1727 = vmatpush3.bf16.xpose.msra.mxu1 %v835_v24  ;;  %1084 = vrot.lane.b32.xlu1 %v1932_v22, %s2307_s27  ;;  %v1725_v27 = vpop.f32.mrf.mxu0  ;;  %v829_v36 = vld [vmem:[#allocation3] sm:$0xf] }
 0x18a   : > { %955 = vrot.lane.b32.xlu0 %v1933_v25, %s2308_s17  ;;  %1738 = vmatprep.subr.bf16.mxu1 %v2305_v0  ;;  %v1934_v28 = vld [vmem:[#allocation2] ss:$0 sps:$4 sm:$0xff]   ;;  %v902_v37 = vsel %vm900_vm4, %v829_v36, 0  ;;  %v1935_v20 = vld [vmem:[#allocation3] ss:$0 sps:$4 sm:$0xff]  }
 0x18b   : > { %1733 = vmatpush3.bf16.msra.mxu0 %v902_v37  ;;  %v1936_v37 = vld [vmem:[#allocation3] ss:$0 sps:$4 sm:$0xff]  }
 0x18c   : > { %1744 = vmatprep.subr.bf16.mxu0 %v2305_v0 }
 0x18d   : > { %1079 = vrot.lane.b32.xlu1 %v825_v26, %s2307_s27 }
 0x18e   : > { %950 = vrot.lane.b32.xlu0 %v825_v26, %s2308_s17 }
 0x190   : > { %1729 = vmatmul.mubr.msk.bf16.vlgmr.msra.gmra.mxu1 %vm830_vm3, %v825_v26 }
 0x191   : > { %1208 = vrot.lane.b32.xlu1 %v825_v26, %s2309_s15  ;;  %1740 = vmatprep.mubr.msk.bf16.mxu1 %vm2306_vm0, %v2305_v0 }
 0x192   : > { %1213 = vrot.lane.b32.xlu0 %v1934_v28, %s2309_s15 }
 0x1fb   : > { %v1085_v40 = vpop.permute.xlu1 %1084 }
 0x1fc   : > { %v956_v38 = vpop.permute.xlu0 %955  ;;  %v1090_v42 = vsel %vm830_vm3, %v1085_v40, 0  ;;  %v1937_v40 = vld [vmem:[#allocation3] ss:$0 sps:$4 sm:$0xff]  }
 0x1fd   : > { %v961_v39 = vsel %vm830_vm3, %v956_v38, 0 }
 0x1fe   : > { %1739 = vmatpush3.bf16.xpose.msra.mxu1 %v961_v39 }
 0x1ff   : > { %1750 = vmatprep.subr.bf16.mxu1 %v2305_v0  ;;  %v1080_v44 = vpop.permute.xlu1 %1079 }
 0x200   : > { %v951_v41 = vpop.permute.xlu0 %950 }
 0x203   : > { %v1209_v46 = vpop.permute.xlu1 %1208 }
 0x204   : > { %v1214_v43 = vpop.permute.xlu0 %1213 }
 0x205   : > { %1741 = vmatmul.mubr.msk.bf16.vlgmr.msra.gmra.mxu1 %vm830_vm3, %v951_v41  ;;  %v1219_v45 = vsel %vm830_vm3, %v1214_v43, 0 }
 0x206   : > { %1751 = vmatpush3.bf16.xpose.msra.mxu1 %v1090_v42  ;;  %1752 = vmatprep.mubr.msk.bf16.mxu1 %vm2306_vm0, %v2305_v0 }
 0x207   : > { %1762 = vmatprep.subr.bf16.mxu1 %v2305_v0 }
 0x20d   : > { %1753 = vmatmul.mubr.msk.bf16.vlgmr.msra.gmra.mxu1 %vm830_vm3, %v1080_v44 }
 0x20e   : > { %1763 = vmatpush3.bf16.xpose.msra.mxu1 %v1219_v45  ;;  %1764 = vmatprep.mubr.msk.bf16.mxu1 %vm2306_vm0, %v2305_v0 }
 0x20f   : > { %1774 = vmatprep.subr.bf16.mxu1 %v2305_v0 }
 0x215   : > { %1765 = vmatmul.mubr.msk.bf16.vlgmr.msra.gmra.mxu1 %vm830_vm3, %v1209_v46 }
 0x216   : > { %1778 = vmatprep.mubr.msk.bf16.mxu1 %vm2306_vm0, %v2305_v0  ;;  %1775 = vmatpush3.bf16.msra.mxu1 %v1938_v53 }
 0x217   : > { %1776 = vmatprep.subr.bf16.mxu1 %v2305_v0 }
 0x250   : > { %v871_v54 = vpop.f32.mrf.mxu1 }
 0x251   : > { %v883_v55 = vsel %vm882_vm6, -3.4028235e+38, %v871_v54 }
 0x252   : > { %v1730_v56 = vpop.f32.mrf.mxu1  ;;  %v884_v57 = vsel %vm830_vm3, %v883_v55, -inf }
 0x253   : > { %885 = vmax.xlane.f32.xlu0 %v884_v57 }
 0x254   : > { %v874_v58 = vpop.f32.mrf.mxu1 }
 0x256   : > { %v1731_v59 = vpop.f32.mrf.mxu1 }
 0x2c5   : > { %v997_v60 = vpop.f32.mrf.mxu1 }
 0x2c6   : > { %v1003_v61 = vsel %vm882_vm6, -3.4028235e+38, %v997_v60 }
 0x2c7   : > { %v1742_v62 = vpop.f32.mrf.mxu1  ;;  %v1004_v63 = vsel %vm830_vm3, %v1003_v61, -inf }
 0x2c8   : > { %1005 = vmax.xlane.f32.xlu1 %v1004_v63 }
 0x2c9   : > { %v1000_v1 = vpop.f32.mrf.mxu1 }
 0x2cb   : > { %v1743_v2 = vpop.f32.mrf.mxu1 }
 0x2cd   : > { %v1126_v3 = vpop.f32.mrf.mxu1 }
 0x2ce   : > { %v1132_v4 = vsel %vm882_vm6, -3.4028235e+38, %v1126_v3 }
 0x2cf   : > { %v1754_v5 = vpop.f32.mrf.mxu1  ;;  %v1133_v6 = vsel %vm830_vm3, %v1132_v4, -inf }
 0x2d0   : > { %1134 = vmax.xlane.f32.xlu0 %v1133_v6 }
 0x2d1   : > { %v1129_v7 = vpop.f32.mrf.mxu1 }
 0x2d3   : > { %v1755_v8 = vpop.f32.mrf.mxu1 }
 0x2d5   : > { %v1255_v9 = vpop.f32.mrf.mxu1 }
 0x2d6   : > { %v1261_v10 = vsel %vm882_vm6, -3.4028235e+38, %v1255_v9 }
 0x2d7   : > { %v1766_v11 = vpop.f32.mrf.mxu1  ;;  %v1262_v12 = vsel %vm830_vm3, %v1261_v10, -inf }
 0x2d8   : > { %1263 = vmax.xlane.f32.xlu0 %v1262_v12 }
 0x2d9   : > { %v1258_v13 = vpop.f32.mrf.mxu1 }
 0x2da   : > { %v1939_v13 = vld [vmem:[%s2783_s10] sm:$0xff]  }
 0x2db   : > { %v1767_v14 = vpop.f32.mrf.mxu1  ;;  %1777 = vmatpush3.bf16.msra.mxu1 %v1939_v13 }
 0x2dc   : > { %v886_v15 = vpop.xlane.xlu0 %885 }
 0x2dd   : > { %v887_v16 = vsub.f32 %v883_v55, %v886_v15 }
 0x2df   : > { %v888_v17 = vmul.f32 1.442695, %v887_v16 }
 0x2e1   : > { %1940 = vpow2.f32 %v888_v17 }
 0x2ee   : > { %v1941_v18 = vpop.eup %1940 }
 0x2ef   : > { %v890_v19 = vsel %vm830_vm3, %v1941_v18, 0.0 }
 0x2f0   : > { %891 = vadd.xlane.f32.xlu1 %v890_v19 }
 0x301   : > { %1020 = vrot.lane.b32.xlu1 %v1935_v20, %s2308_s17  ;;  %s608_s17 = scalar_lea.vmem [#allocation20], %s1633_s6 }
 0x351   : > { %v1006_v21 = vpop.xlane.xlu1 %1005 }
 0x352   : > { %v1007_v22 = vsub.f32 %v1003_v61, %v1006_v21 }
 0x354   : > { %v1008_v23 = vmul.f32 1.442695, %v1007_v22 }
 0x356   : > { %1942 = vpow2.f32 %v1008_v23 }
 0x359   : > { %v1135_v24 = vpop.xlane.xlu0 %1134 }
 0x35a   : > { %v1136_v25 = vsub.f32 %v1132_v4, %v1135_v24 }
 0x35c   : > { %v1137_v26 = vmul.f32 1.442695, %v1136_v25 }
 0x35e   : > { %1944 = vpow2.f32 %v1137_v26  ;;  %v1663_v26 = vld [vmem:[%s2840_s13] ss:$0 sm:$0xff] }
 0x361   : > { %v1264_v27 = vpop.xlane.xlu0 %1263 }
 0x362   : > { %v1265_v28 = vsub.f32 %v1261_v10, %v1264_v27 }
 0x363   : > { %v1943_v29 = vpop.eup %1942 }
 0x364   : > { %v1266_v30 = vmul.f32 1.442695, %v1265_v28  ;;  %v1010_v31 = vsel %vm830_vm3, %v1943_v29, 0.0 }
 0x365   : > { %1011 = vadd.xlane.f32.xlu0 %v1010_v31 }
 0x366   : > { %1946 = vpow2.f32 %v1266_v30 }
 0x36b   : > { %v1945_v32 = vpop.eup %1944 }
 0x36c   : > { %v1139_v33 = vsel %vm830_vm3, %v1945_v32, 0.0 }
 0x36d   : > { %1140 = vadd.xlane.f32.xlu1 %v1139_v33 }
 0x373   : > { %v1947_v34 = vpop.eup %1946 }
 0x374   : > { %v1268_v35 = vsel %vm830_vm3, %v1947_v34, 0.0 }
 0x375   : > { %1269 = vadd.xlane.f32.xlu0 %v1268_v35 }
 0x379   : > { %v892_v36 = vpop.xlane.xlu1 %891 }
 0x37a   : > { %1948 = vrcp.f32 %v892_v36 }
 0x37d   : > { %v1021_v41 = vpop.permute.xlu1 %1020 }
 0x37e   : > { %1278 = vrot.lane.b32.xlu1 %v1936_v37, %s2309_s15  ;;  %v1026_v44 = vsel %vm900_vm4, %v1021_v41, 0  ;;  %s1418_s15 = sshll.u32 %s608_s17, 4  ;;  %s2726_s15 = int_to_ptr.vmem [resolvable:$true] %s1418_s15 }
 0x37f   : > { %p2203_p6 = scmp.lt.s32.totalorder %s2726_s15, %s2201_s29 }
 0x387   : > { %v1949_v38 = vpop.eup %1948 }
 0x388   : > { %v894_v39 = vmul.f32 %v1949_v38, %v1941_v18 }
 0x38a   : > { %v895_v42 = vsel %vm882_vm6, 0.0, %v894_v39 }
 0x38b   : > { %1149 = vrot.lane.b32.xlu0 %v1937_v40, %s2307_s27  ;;  %v896_v43 = vpack.c.bf16 %v895_v42, %v895_v42  ;;  %s1668_s27 = sshll.u32 %s2284_s24, 7  ;;  %s2196_s24 = scalar_lea.vmem %s2726_s15, 128 }
 0x38c   : > { %s2724_s14 = scalar_lea.hbm %s2841_s19, %s1668_s27  ;;  %p2197_p12 = scmp.ne.s32.totalorder %s2726_s15, %s2196_s24 }
 0x38d   : > { %1735 = vmatmul.mubr.msk.bf16.vlgmr.msra.gmra.mxu0 %vm830_vm3, %v896_v43  ;;  %p2204_p2 = scmp.lt.s32.totalorder %s2202_s4, %s2196_s24 }
 0x38e   : > { %1745 = vmatpush3.bf16.msra.mxu0 %v1026_v44  ;;  %1746 = vmatprep.mubr.msk.bf16.mxu0 %vm2306_vm0, %v2305_v0  ;;  %p2198_p7 = pnand %p2197_p12, %p2842_p10 }
 0x38f   : > { %1756 = vmatprep.subr.bf16.mxu0 %v2305_v0  ;;  %p2205_p11 = por %p2204_p2, %p2203_p6 }
 0x390   : > { %p2199_p13 = pneg %p2198_p7 }
 0x392   : > { %p2206_p3 = pnand %p2205_p11, %p2199_p13 }
 0x3ee   : > { %v1012_v45 = vpop.xlane.xlu0 %1011 }
 0x3ef   : > { %1950 = vrcp.f32 %v1012_v45 }
 0x3f6   : > { %v1141_v46 = vpop.xlane.xlu1 %1140 }
 0x3f7   : > { %1952 = vrcp.f32 %v1141_v46 }
 0x3fa   : > { %v1279_v57 = vpop.permute.xlu1 %1278 }
 0x3fb   : > { %v1284_v60 = vsel %vm900_vm4, %v1279_v57, 0 }
 0x3fc   : > { %v1951_v47 = vpop.eup %1950 }
 0x3fd   : > { %v1014_v48 = vmul.f32 %v1951_v47, %v1943_v29 }
 0x3fe   : > { %v1270_v49 = vpop.xlane.xlu0 %1269 }
 0x3ff   : > { %1954 = vrcp.f32 %v1270_v49  ;;  %v1015_v50 = vsel %vm882_vm6, 0.0, %v1014_v48 }
 0x400   : > { %v1016_v51 = vpack.c.bf16 %v1015_v50, %v1015_v50 }
 0x402   : > { %1747 = vmatmul.mubr.msk.bf16.vlgmr.msra.gmra.mxu0 %vm830_vm3, %v1016_v51  ;;  %v1150_v52 = vpop.permute.xlu0 %1149 }
 0x403   : > { %v1155_v54 = vsel %vm900_vm4, %v1150_v52, 0  ;;  %1758 = vmatprep.mubr.msk.bf16.mxu0 %vm2306_vm0, %v2305_v0 }
 0x404   : > { %v1953_v55 = vpop.eup %1952  ;;  %1757 = vmatpush3.bf16.msra.mxu0 %v1155_v54 }
 0x405   : > { %1768 = vmatprep.subr.bf16.mxu0 %v2305_v0  ;;  %v1143_v56 = vmul.f32 %v1953_v55, %v1945_v32 }
 0x407   : > { %v1144_v58 = vsel %vm882_vm6, 0.0, %v1143_v56 }
 0x408   : > { %v1145_v59 = vpack.c.bf16 %v1144_v58, %v1144_v58 }
 0x40a   : > { %1759 = vmatmul.mubr.msk.bf16.vlgmr.msra.gmra.mxu0 %vm830_vm3, %v1145_v59 }
 0x40b   : > { %1769 = vmatpush3.bf16.msra.mxu0 %v1284_v60  ;;  %1770 = vmatprep.mubr.msk.bf16.mxu0 %vm2306_vm0, %v2305_v0 }
 0x40c   : > { %v1955_v61 = vpop.eup %1954 }
 0x40d   : > { %v1272_v62 = vmul.f32 %v1955_v61, %v1947_v34 }
 0x40f   : > { %v1273_v63 = vsel %vm882_vm6, 0.0, %v1272_v62 }
 0x410   : > { %v1274_v1 = vpack.c.bf16 %v1273_v63, %v1273_v63 }
 0x412   : > { %1771 = vmatmul.mubr.msk.bf16.vlgmr.msra.gmra.mxu0 %vm830_vm3, %v1274_v1 }
 0x44d   : > { %v938_v2 = vpop.f32.mrf.mxu0 }
 0x44e   : > { %v944_v3 = vpack.c.bf16 %v938_v2, %v938_v2 }
 0x44f   : > { %v1736_v4 = vpop.f32.mrf.mxu0 }
 0x450   : > { %946 = vst.msk [vmem:[#allocation4] sm:$0xf] %vm945_vm7, %v944_v3 }
 0x451   : > { %v941_v5 = vpop.f32.mrf.mxu0 }
 0x453   : > { %v1737_v6 = vpop.f32.mrf.mxu0 }
 0x4c2   : > { %v1062_v7 = vpop.f32.mrf.mxu0 }
 0x4c3   : > { %v1671_v8 = vpack.c.bf16 %v1062_v7, %v1062_v7 }
 0x4c4   : > { %v1748_v9 = vpop.f32.mrf.mxu0 }
 0x4c5   : > { %1072 = vrot.lane.b32.xlu1 %v1671_v8, %s2311_s21  ;;  %s1404_s21 = scalar_lea.sflag [#allocation7], %s2573_s8 }
 0x4c6   : > { %v1065_v10 = vpop.f32.mrf.mxu0 }
 0x4c8   : > { %v1749_v11 = vpop.f32.mrf.mxu0 }
 0x4ca   : > { %v1191_v12 = vpop.f32.mrf.mxu0 }
 0x4cb   : > { %v1672_v14 = vpack.c.bf16 %v1191_v12, %v1191_v12 }
 0x4cc   : > { %v1760_v15 = vpop.f32.mrf.mxu0 }
 0x4cd   : > { %1201 = vrot.lane.b32.xlu0 %v1672_v14, %s2312_s26 }
 0x4ce   : > { %v1194_v16 = vpop.f32.mrf.mxu0 }
 0x4d0   : > { %v1761_v17 = vpop.f32.mrf.mxu0 }
 0x4d2   : > { %v1320_v18 = vpop.f32.mrf.mxu0 }
 0x4d3   : > { %v1673_v19 = vpack.c.bf16 %v1320_v18, %v1320_v18 }
 0x4d4   : > { %v1772_v20 = vpop.f32.mrf.mxu0 }
 0x4d5   : > { %1330 = vrot.lane.b32.xlu1 %v1673_v19, %s2313_s11 }
 0x4d6   : > { %v1323_v21 = vpop.f32.mrf.mxu0 }
 0x4d8   : > { %v1773_v22 = vpop.f32.mrf.mxu0 }
 0x537   : > { %v1073_v23 = vpop.permute.xlu1 %1072 }
 0x538   : > { %1076 = vst.msk [vmem:[#allocation4] sm:$0xf] %vm1075_vm8, %v1073_v23 }
 0x53f   : > { %v1202_v0 = vpop.permute.xlu0 %1201 }
 0x540   : > { %1205 = vst.msk [vmem:[#allocation4] sm:$0xf] %vm1204_vm9, %v1202_v0 }
 0x547   : > { %v1331_v24 = vpop.permute.xlu1 %1330 }
 0x548   : > { %1334 = vst.msk [vmem:[#allocation4] sm:$0xf] %vm1333_vm10, %v1331_v24 }
 0x54f   : > { %v1335_v25 = vld [vmem:[#allocation4] sm:$0xf] }
 0x550   : > { %1779 = vmatmul.mubr.msk.bf16.vlgmr.msra.gmra.mxu1 %vm641_vm1, %v1335_v25 }
 0x610   : > { %v1396_v27 = vpop.f32.mrf.mxu1 }
 0x611   : > { %v1397_v28 = vadd.f32 %v1663_v26, %v1396_v27 }
 0x612   : > { %v1780_v29 = vpop.f32.mrf.mxu1 }
 0x613   : > { %1402 = vst.msk [vmem:[%s608_s17] sm:$0xff] %vm641_vm1, %v1397_v28 }
 0x614   : > { %v1399_v30 = vpop.f32.mrf.mxu1 }
 0x615   : > { %2209 = shalt.err (!%p2206_p3)
}
 0x616   : > { %s2210_s16 = scalar_lea.hbm %s2724_s14, 128  ;;  %s2214_s11 = scalar_lea.hbm %s2841_s19, 256 }
 0x617   : > { %p2211_p5 = scmp.ne.s32.totalorder %s2724_s14, %s2210_s16  ;;  %p2215_p8 = scmp.lt.s32.totalorder %s2724_s14, %s2841_s19 }
 0x618   : > { %p2216_p9 = scmp.lt.s32.totalorder %s2214_s11, %s2210_s16 }
 0x619   : > { %p2212_p0 = pnand %p2211_p5, %p2842_p10 }
 0x61a   : > { %p2217_p1 = por %p2216_p9, %p2215_p8 }
 0x61b   : > { %p2213_p4 = pneg %p2212_p0 }
 0x61d   : > { %p2218_p12 = pnand %p2217_p1, %p2213_p4 }
 0x61f   : > { %2221 = shalt.err (!%p2218_p12)
}
 0x620   : > { %1812 = dma.vmem_to_hbm [thread:$0]  (%p2842_p10), %s2726_s15, 128, %s2724_s14, %s1404_s21   ;;  %v1781_v31 = vpop.f32.mrf.mxu1 }
 0x621 PF: > { %s2843_s28 = sld [smem:[#allocation27_spill]] }
 0x622   : > { %s2844_s13 = sld [smem:[#allocation33_spill]] }
 0x623   : > { %s2845_s27 = sld [smem:[#allocation29_spill]] }
 0x627   : > { %s1430_s17 = sand.u32 1, %s2843_s28  }
 0x628   : > { %p2846_p7 = scmp.ne.s32.totalorder %s2844_s13, 0  ;;  %s1431_s18 = scalar_lea.sflag [#allocation7], %s1430_s17 }
 0x629   : > { %p2847_p13 = scmp.ge.s32.totalorder %s2845_s27, 2 }
 0x62b   : > { %p1844_p6 = pnand %p2847_p13, %p2846_p7 }
 0x62d   : > { %p1845_p2 = pneg %p1844_p6 }
 0x62f   : > { %2267 = dma.done.wait (%p1845_p2), %s1431_s18, 128  }
 0x630   : > { %2269 = vsyncadd (%p1845_p2), %s1431_s18, 4294967168  ;;  %s34_s26 = sadd.s32 1, %s2845_s27   ;;  %s2848_s20 = sld [smem:[#allocation32_spill]] }
 0x631   : > { %p31_p11 = scmp.ge.s32.totalorder %s34_s26, 4   ;;  %s2849_s24 = sld [smem:[#allocation28_spill]] }
 0x632   : > { %s2850_s25 = sld [smem:[#allocation30_spill]]  ;;  %s2851_s21 = smov %s2276_s22 }
 0x633   : > { %s2852_s22 = smov %s2280_s23  ;;  %33 = sbr.rel (!%p31_p11) target bundleno = 17 (0x11), region = 168 }
 0x636   : > { %s2853_s23 = smov %s2848_s20 }
 0x638   :  { %1436 = vsyncpa [#allocation6], 1 }
 0x639   :  { %1438 = vsyncpa [#allocation6 + $0x1], 1 }
 0x63a   :  { %1439 = vsyncpa [#allocation9], 1 }
 0x63b   :  { %1441 = vsyncpa [#allocation9 + $0x1], 1 }
 0x63c   :  { %1442 = vsyncpa [#allocation12], 1 }
 0x63d   :  { %1443 = vsyncpa [#allocation15], 1 }
 0x63e   :  { %1444 = vsyncpa [#allocation18], 1 }
 0x63f   :  { %1445 = vsyncpa [#allocation7], 1 }
 0x640   :  { %1447 = vsyncpa [#allocation7 + $0x1], 1 }

</bundles_post_ra>
